<compile_context>
chip_gen: v5e
topology: v5e:2x2
jax: 0.10.0
libtpu: 0.0.40
codegen_flags: <defaults>
</compile_context>

<pallas_src>
import math
from functools import partial

import jax
import jax.numpy as jnp
from jax.experimental import pallas as pl
from jax.experimental.pallas import tpu as pltpu

# ---- module-consistent small test config ----
N_HEADS = 4
D_MODEL = 32
D_K = D_MODEL // N_HEADS
KQ_SAME = True          # kq_same == True -> q uses k_linear
SEQ = 8
BATCH = 2


# ----------------------------- fused kernel ---------------------------------

def _fused_mha_kernel(qkv_ref, mask_ref, w_ref, b_ref, gam_ref, o_ref,
                      *, batch, seq, n_heads, d_k, zero_pad):
    S = seq
    D = n_heads * d_k
    neg = jnp.float32(-1e32)
    inv_sqrt_dk = jnp.float32(1.0 / math.sqrt(d_k))

    def mm(a, b):                       # f32 matmul, f32 accumulation on the MXU
        return jnp.dot(a, b, preferred_element_type=jnp.float32)

    # ---- Q/K/V projections on the whole (B*S, D) slab (one matmul each) ----
    q_all = mm(qkv_ref[0], w_ref[0]) + b_ref[0:1, :]     # (B*S, D)
    k_all = mm(qkv_ref[1], w_ref[1]) + b_ref[1:2, :]
    v_all = mm(qkv_ref[2], w_ref[2]) + b_ref[2:3, :]

    # ---- constants hoisted out of all loops ----
    mask = mask_ref[...]                                  # (S, S) float {0, 1}
    mask_is_zero = mask == 0.0
    row = jax.lax.broadcasted_iota(jnp.int32, (S, S), 0)  # query index i
    col = jax.lax.broadcasted_iota(jnp.int32, (S, S), 1)  # key index j
    cum_mat = (row <= col).astype(jnp.float32)            # cumsum along key axis
    pos_eff = jnp.abs(col - row).astype(jnp.float32)      # |j - i|
    first_row = row == 0                                  # zero_pad row mask
    lane = jax.lax.broadcasted_iota(jnp.int32, (1, D), 1)
    head_masks = [                                        # (1, D) lane masks per head
        jnp.logical_and(lane >= h * d_k, lane < (h + 1) * d_k).astype(jnp.float32)
        for h in range(n_heads)
    ]

    ctx_rows = []
    for b in range(batch):                                # static unroll over batch
        r0, r1 = b * S, (b + 1) * S                       # 8-aligned sublane slices
        qb = q_all[r0:r1, :]                              # (S, D)
        kb = k_all[r0:r1, :]
        vb = v_all[r0:r1, :]

        ctx_b = jnp.zeros((S, D), jnp.float32)
        for h in range(n_heads):                          # static unroll over heads
            m_h = head_masks[h]
            # masking one operand selects the head's d_k-wide sub-contraction
            scores = jnp.einsum('qd,kd->qk', qb * m_h, kb,
                                preferred_element_type=jnp.float32) * inv_sqrt_dk

            # --- distance-decay statistics (the torch.no_grad() block), f32 ---
            masked = jnp.where(mask_is_zero, neg, scores)
            masked = masked - jnp.max(masked, axis=-1, keepdims=True)
            e1 = jnp.exp(masked)
            sm = e1 / jnp.sum(e1, axis=-1, keepdims=True)
            scores_ = sm * mask
            distcum = mm(scores_, cum_mat)                # cumsum as triangular matmul
            disttotal = jnp.sum(scores_, axis=-1, keepdims=True)
            dist = jnp.sqrt(jnp.maximum((disttotal - distcum) * pos_eff, 0.0))

            gam_h = gam_ref[h]                            # scalar -softplus(gamma_h) from SMEM
            total_effect = jnp.clip(jnp.exp(dist * gam_h), 1e-5, 1e5)

            # --- final attention ---
            s2 = jnp.where(mask_is_zero, neg, scores * total_effect)
            s2 = s2 - jnp.max(s2, axis=-1, keepdims=True)
            e2 = jnp.exp(s2)
            attn = e2 / jnp.sum(e2, axis=-1, keepdims=True)
            if zero_pad:                                  # zero first query row
                attn = jnp.where(first_row, 0.0, attn)
            # TODO(synk): dropout(attn) is identity here (inference); training-mode
            # dropout would need pltpu.prng_random_bits.

            # non-head lanes of (vb * m_h) are zero -> sum over heads == concat
            ctx_b = ctx_b + mm(attn, vb * m_h)            # (S, D)
        ctx_rows.append(ctx_b)

    ctx_all = jnp.concatenate(ctx_rows, axis=0)           # (B*S, D) == per-head concat
    out = mm(ctx_all, w_ref[3]) + b_ref[3:4, :]           # single output projection
    o_ref[...] = out.astype(o_ref.dtype)


# ------------------------------ wrapper --------------------------------------

def multi_head_attention(params, q, k, v, mask, zero_pad,
                         *, n_heads=N_HEADS, kq_same=KQ_SAME):
    B, S, D = q.shape
    d_k = D // n_heads

    q_w = params['k_w'] if kq_same else params['q_w']
    q_b = params['k_b'] if kq_same else params['q_b']

    # Consolidated, few DMA streams (feedback: each BlockSpec is its own stream).
    qkv = jnp.stack([q, k, v], axis=0).reshape(3, B * S, D).astype(jnp.float32)
    w_pack = jnp.stack([q_w, params['k_w'], params['v_w'], params['out_w']], axis=0)
    b_pack = jnp.stack([q_b, params['k_b'], params['v_b'], params['out_b']], axis=0)
    # gamma = -softplus(gammas) precomputed outside the kernel (plain XLA op).
    gam = (-jax.nn.softplus(params['gammas'].reshape(n_heads))).astype(jnp.float32)
    mask_f = mask.astype(jnp.float32)

    kernel = partial(_fused_mha_kernel, batch=B, seq=S, n_heads=n_heads, d_k=d_k,
                     zero_pad=bool(zero_pad))

    vmem = pl.BlockSpec(memory_space=pltpu.MemorySpace.VMEM)
    smem = pl.BlockSpec(memory_space=pltpu.MemorySpace.SMEM)

    out_flat = pl.pallas_call(
        kernel,
        out_shape=jax.ShapeDtypeStruct((B * S, D), jnp.float32),
        # No grid: batch is folded into a single invocation (feedback item 1 / 8).
        in_specs=[vmem,   # qkv   (3, B*S, D)
                  vmem,   # mask  (S, S)
                  vmem,   # W     (4, D, D): [q(or k), k, v, out]
                  vmem,   # b     (4, D)
                  smem],  # gam   (n_heads,)  scalars in SMEM
        out_specs=vmem,
    )(qkv, mask_f, w_pack, b_pack, gam)

    return out_flat.reshape(B, S, D)


# --------------------------- pure-JAX reference -------------------------------

def mha_reference(params, q, k, v, mask, zero_pad, *, n_heads=N_HEADS, kq_same=KQ_SAME):
    B, S, D = q.shape
    d_k = D // n_heads
    q_w = params['k_w'] if kq_same else params['q_w']
    q_b = params['k_b'] if kq_same else params['q_b']

    def proj(x, w, b):
        return (x @ w + b).reshape(B, S, n_heads, d_k).transpose(0, 2, 1, 3)

    qh = proj(q, q_w, q_b)
    kh = proj(k, params['k_w'], params['k_b'])
    vh = proj(v, params['v_w'], params['v_b'])

    scores = jnp.einsum('bhqd,bhkd->bhqk', qh, kh) / math.sqrt(d_k)
    maskb = mask[None, None, :, :]
    x1 = jnp.arange(S)[None, :]
    x2 = jnp.arange(S)[:, None]

    scores_ = jnp.where(maskb == 0, -1e32, scores)
    scores_ = jax.nn.softmax(scores_, axis=-1) * maskb
    distcum = jnp.cumsum(scores_, axis=-1)
    disttotal = jnp.sum(scores_, axis=-1, keepdims=True)
    pos_eff = jnp.abs(x1 - x2)[None, None, :, :].astype(jnp.float32)
    dist = jnp.sqrt(jnp.maximum((disttotal - distcum) * pos_eff, 0.0))

    gamma = (-jax.nn.softplus(params['gammas'])).reshape(1, n_heads, 1, 1)
    total_effect = jnp.clip(jnp.exp(dist * gamma), 1e-5, 1e5)

    scores2 = jnp.where(maskb == 0, -1e32, scores * total_effect)
    attn = jax.nn.softmax(scores2, axis=-1)
    if zero_pad:
        attn = attn.at[:, :, 0, :].set(0.0)
    out = jnp.einsum('bhqk,bhkd->bhqd', attn, vh)
    concat = out.transpose(0, 2, 1, 3).reshape(B, S, D)
    return concat @ params['out_w'] + params['out_b']


# ------------------------------ param init -----------------------------------

def _xavier(key, shape):
    fan_in, fan_out = shape[0], shape[1]
    limit = math.sqrt(6.0 / (fan_in + fan_out))
    return jax.random.uniform(key, shape, jnp.float32, -limit, limit)


def init_mha_params(key, d_model=D_MODEL, n_heads=N_HEADS, kq_same=KQ_SAME):
    ks = jax.random.split(key, 5)
    p = {
        'k_w': _xavier(ks[0], (d_model, d_model)),
        'k_b': jnp.zeros((d_model,), jnp.float32),
        'v_w': _xavier(ks[1], (d_model, d_model)),
        'v_b': jnp.zeros((d_model,), jnp.float32),
        'out_w': _xavier(ks[2], (d_model, d_model)),
        'out_b': jnp.zeros((d_model,), jnp.float32),
        'gammas': jax.random.uniform(ks[3], (n_heads,), jnp.float32, -1.0, 1.0),
    }
    if not kq_same:
        p['q_w'] = _xavier(ks[4], (d_model, d_model))
        p['q_b'] = jnp.zeros((d_model,), jnp.float32)
    return p


# --------------------------------- main ---------------------------------------

if __name__ == "__main__":
    root = jax.random.PRNGKey(0)
    kq, kk, kv, kp = jax.random.split(root, 4)
    q = jax.random.normal(kq, (BATCH, SEQ, D_MODEL), jnp.float32)
    k = jax.random.normal(kk, (BATCH, SEQ, D_MODEL), jnp.float32)
    v = jax.random.normal(kv, (BATCH, SEQ, D_MODEL), jnp.float32)
    params = init_mha_params(kp)

    # AKT "mask == 0" usage: strictly-causal mask (j < i) + zero_pad=True
    i = jnp.arange(SEQ)[:, None]
    j = jnp.arange(SEQ)[None, :]
    mask = (j < i).astype(jnp.float32)

    out = multi_head_attention(params, q, k, v, mask, zero_pad=True)
    out = jax.block_until_ready(out)

    ref = mha_reference(params, q, k, v, mask, zero_pad=True)

    assert out.shape == (BATCH, SEQ, D_MODEL)
    assert bool(jnp.all(jnp.isfinite(out)))
    assert float(jnp.max(jnp.abs(out - ref))) < 5e-2
    print("KERNEL_OK")
</pallas_src>

<mosaic_0001>
module attributes {stable_mosaic.version = 11 : i64} {
  func.func @_fused_mha_kernel(%arg0: memref<3x16x32xf32, #tpu.memory_space<vmem>>, %arg1: memref<8x8xf32, #tpu.memory_space<vmem>>, %arg2: memref<4x32x32xf32, #tpu.memory_space<vmem>>, %arg3: memref<4x32xf32, #tpu.memory_space<vmem>>, %arg4: memref<4xf32, #tpu.memory_space<smem>>, %arg5: memref<16x32xf32, #tpu.memory_space<vmem>>) attributes {dimension_semantics = [], scalar_prefetch = 0 : i64, scratch_operands = 0 : i64, tpu.core_type = #tpu.core_type<tc>} {
    %c0 = arith.constant 0 : index
    %c0_0 = arith.constant 0 : index
    %c0_1 = arith.constant 0 : index
    %0 = vector.load %arg0[%c0, %c0_0, %c0_1] : memref<3x16x32xf32, #tpu.memory_space<vmem>>, vector<1x16x32xf32>
    %1 = vector.shape_cast %0 : vector<1x16x32xf32> to vector<16x32xf32>
    %c0_2 = arith.constant 0 : index
    %c0_3 = arith.constant 0 : index
    %c0_4 = arith.constant 0 : index
    %2 = vector.load %arg2[%c0_2, %c0_3, %c0_4] : memref<4x32x32xf32, #tpu.memory_space<vmem>>, vector<1x32x32xf32>
    %3 = vector.shape_cast %2 : vector<1x32x32xf32> to vector<32x32xf32>
    %cst = arith.constant dense<0.000000e+00> : vector<16x32xf32>
    %4 = tpu.matmul %1, %3, %cst {dimension_numbers = #tpu.dot_dimension_numbers<[1], [0], [0], [1], [0, 0, 1, 1], [], []>} : vector<16x32xf32>, vector<32x32xf32>, vector<16x32xf32> -> vector<16x32xf32>
    %c0_5 = arith.constant 0 : index
    %c0_6 = arith.constant 0 : index
    %5 = vector.load %arg3[%c0_5, %c0_6] : memref<4x32xf32, #tpu.memory_space<vmem>>, vector<1x32xf32>
    %6 = vector.broadcast %5 : vector<1x32xf32> to vector<16x32xf32>
    %7 = arith.addf %4, %6 : vector<16x32xf32>
    %c1 = arith.constant 1 : index
    %c0_7 = arith.constant 0 : index
    %c0_8 = arith.constant 0 : index
    %8 = vector.load %arg0[%c1, %c0_7, %c0_8] : memref<3x16x32xf32, #tpu.memory_space<vmem>>, vector<1x16x32xf32>
    %9 = vector.shape_cast %8 : vector<1x16x32xf32> to vector<16x32xf32>
    %c1_9 = arith.constant 1 : index
    %c0_10 = arith.constant 0 : index
    %c0_11 = arith.constant 0 : index
    %10 = vector.load %arg2[%c1_9, %c0_10, %c0_11] : memref<4x32x32xf32, #tpu.memory_space<vmem>>, vector<1x32x32xf32>
    %11 = vector.shape_cast %10 : vector<1x32x32xf32> to vector<32x32xf32>
    %cst_12 = arith.constant dense<0.000000e+00> : vector<16x32xf32>
    %12 = tpu.matmul %9, %11, %cst_12 {dimension_numbers = #tpu.dot_dimension_numbers<[1], [0], [0], [1], [0, 0, 1, 1], [], []>} : vector<16x32xf32>, vector<32x32xf32>, vector<16x32xf32> -> vector<16x32xf32>
    %c1_13 = arith.constant 1 : index
    %c0_14 = arith.constant 0 : index
    %13 = vector.load %arg3[%c1_13, %c0_14] : memref<4x32xf32, #tpu.memory_space<vmem>>, vector<1x32xf32>
    %14 = vector.broadcast %13 : vector<1x32xf32> to vector<16x32xf32>
    %15 = arith.addf %12, %14 : vector<16x32xf32>
    %c2 = arith.constant 2 : index
    %c0_15 = arith.constant 0 : index
    %c0_16 = arith.constant 0 : index
    %16 = vector.load %arg0[%c2, %c0_15, %c0_16] : memref<3x16x32xf32, #tpu.memory_space<vmem>>, vector<1x16x32xf32>
    %17 = vector.shape_cast %16 : vector<1x16x32xf32> to vector<16x32xf32>
    %c2_17 = arith.constant 2 : index
    %c0_18 = arith.constant 0 : index
    %c0_19 = arith.constant 0 : index
    %18 = vector.load %arg2[%c2_17, %c0_18, %c0_19] : memref<4x32x32xf32, #tpu.memory_space<vmem>>, vector<1x32x32xf32>
    %19 = vector.shape_cast %18 : vector<1x32x32xf32> to vector<32x32xf32>
    %cst_20 = arith.constant dense<0.000000e+00> : vector<16x32xf32>
    %20 = tpu.matmul %17, %19, %cst_20 {dimension_numbers = #tpu.dot_dimension_numbers<[1], [0], [0], [1], [0, 0, 1, 1], [], []>} : vector<16x32xf32>, vector<32x32xf32>, vector<16x32xf32> -> vector<16x32xf32>
    %c2_21 = arith.constant 2 : index
    %c0_22 = arith.constant 0 : index
    %21 = vector.load %arg3[%c2_21, %c0_22] : memref<4x32xf32, #tpu.memory_space<vmem>>, vector<1x32xf32>
    %22 = vector.broadcast %21 : vector<1x32xf32> to vector<16x32xf32>
    %23 = arith.addf %20, %22 : vector<16x32xf32>
    %c0_23 = arith.constant 0 : index
    %c0_24 = arith.constant 0 : index
    %24 = vector.load %arg1[%c0_23, %c0_24] : memref<8x8xf32, #tpu.memory_space<vmem>>, vector<8x8xf32>
    %cst_25 = arith.constant 0.000000e+00 : f32
    %25 = vector.broadcast %cst_25 : f32 to vector<8x8xf32>
    %26 = arith.cmpf oeq, %24, %25 : vector<8x8xf32>
    %27 = tpu.iota {dimensions = array<i32: 0>} : vector<8x8xi32>
    %28 = tpu.iota {dimensions = array<i32: 1>} : vector<8x8xi32>
    %29 = arith.cmpi sle, %27, %28 : vector<8x8xi32>
    %30 = arith.extui %29 : vector<8x8xi1> to vector<8x8xi32>
    %31 = arith.sitofp %30 : vector<8x8xi32> to vector<8x8xf32>
    %32 = arith.subi %28, %27 : vector<8x8xi32>
    %33 = math.absi %32 : vector<8x8xi32>
    %34 = arith.sitofp %33 : vector<8x8xi32> to vector<8x8xf32>
    %c0_i32 = arith.constant 0 : i32
    %35 = vector.broadcast %c0_i32 : i32 to vector<8x8xi32>
    %36 = arith.cmpi eq, %27, %35 : vector<8x8xi32>
    %37 = tpu.iota {dimensions = array<i32: 1>} : vector<1x32xi32>
    %c0_i32_26 = arith.constant 0 : i32
    %38 = vector.broadcast %c0_i32_26 : i32 to vector<1x32xi32>
    %39 = arith.cmpi sge, %37, %38 : vector<1x32xi32>
    %c8_i32 = arith.constant 8 : i32
    %40 = vector.broadcast %c8_i32 : i32 to vector<1x32xi32>
    %41 = arith.cmpi slt, %37, %40 : vector<1x32xi32>
    %42 = arith.andi %39, %41 : vector<1x32xi1>
    %43 = arith.extui %42 : vector<1x32xi1> to vector<1x32xi32>
    %44 = arith.sitofp %43 : vector<1x32xi32> to vector<1x32xf32>
    %c8_i32_27 = arith.constant 8 : i32
    %45 = vector.broadcast %c8_i32_27 : i32 to vector<1x32xi32>
    %46 = arith.cmpi sge, %37, %45 : vector<1x32xi32>
    %c16_i32 = arith.constant 16 : i32
    %47 = vector.broadcast %c16_i32 : i32 to vector<1x32xi32>
    %48 = arith.cmpi slt, %37, %47 : vector<1x32xi32>
    %49 = arith.andi %46, %48 : vector<1x32xi1>
    %50 = arith.extui %49 : vector<1x32xi1> to vector<1x32xi32>
    %51 = arith.sitofp %50 : vector<1x32xi32> to vector<1x32xf32>
    %c16_i32_28 = arith.constant 16 : i32
    %52 = vector.broadcast %c16_i32_28 : i32 to vector<1x32xi32>
    %53 = arith.cmpi sge, %37, %52 : vector<1x32xi32>
    %c24_i32 = arith.constant 24 : i32
    %54 = vector.broadcast %c24_i32 : i32 to vector<1x32xi32>
    %55 = arith.cmpi slt, %37, %54 : vector<1x32xi32>
    %56 = arith.andi %53, %55 : vector<1x32xi1>
    %57 = arith.extui %56 : vector<1x32xi1> to vector<1x32xi32>
    %58 = arith.sitofp %57 : vector<1x32xi32> to vector<1x32xf32>
    %c24_i32_29 = arith.constant 24 : i32
    %59 = vector.broadcast %c24_i32_29 : i32 to vector<1x32xi32>
    %60 = arith.cmpi sge, %37, %59 : vector<1x32xi32>
    %c32_i32 = arith.constant 32 : i32
    %61 = vector.broadcast %c32_i32 : i32 to vector<1x32xi32>
    %62 = arith.cmpi slt, %37, %61 : vector<1x32xi32>
    %63 = arith.andi %60, %62 : vector<1x32xi1>
    %64 = arith.extui %63 : vector<1x32xi1> to vector<1x32xi32>
    %65 = arith.sitofp %64 : vector<1x32xi32> to vector<1x32xf32>
    %66 = vector.extract_strided_slice %7 {offsets = [0, 0], sizes = [8, 32], strides = [1, 1]} : vector<16x32xf32> to vector<8x32xf32>
    %67 = vector.extract_strided_slice %15 {offsets = [0, 0], sizes = [8, 32], strides = [1, 1]} : vector<16x32xf32> to vector<8x32xf32>
    %68 = vector.extract_strided_slice %23 {offsets = [0, 0], sizes = [8, 32], strides = [1, 1]} : vector<16x32xf32> to vector<8x32xf32>
    %cst_30 = arith.constant 0.000000e+00 : f32
    %69 = vector.broadcast %cst_30 : f32 to vector<8x32xf32>
    %70 = vector.broadcast %44 : vector<1x32xf32> to vector<8x32xf32>
    %71 = arith.mulf %66, %70 : vector<8x32xf32>
    "tpu.trace_start"() <{level = 10 : i32, message = "qd,kd->qk"}> : () -> ()
    %cst_31 = arith.constant dense<0.000000e+00> : vector<8x8xf32>
    %72 = tpu.matmul %71, %67, %cst_31 {dimension_numbers = #tpu.dot_dimension_numbers<[1], [1], [0], [0], [0, 0, 1, 0], [], []>} : vector<8x32xf32>, vector<8x32xf32>, vector<8x8xf32> -> vector<8x8xf32>
    "tpu.trace_stop"() : () -> ()
    %cst_32 = arith.constant 0.353553385 : f32
    %73 = vector.broadcast %cst_32 : f32 to vector<8x8xf32>
    %74 = arith.mulf %72, %73 : vector<8x8xf32>
    %cst_33 = arith.constant -1.000000e+32 : f32
    %75 = vector.broadcast %cst_33 : f32 to vector<8x8xf32>
    %76 = arith.select %26, %75, %74 : vector<8x8xi1>, vector<8x8xf32>
    %cst_34 = arith.constant dense<0xFF800000> : vector<8xf32>
    %77 = vector.multi_reduction <maximumf>, %76, %cst_34 [1] : vector<8x8xf32> to vector<8xf32>
    %78 = vector.shape_cast %77 : vector<8xf32> to vector<8x1xf32>
    %79 = vector.broadcast %78 : vector<8x1xf32> to vector<8x8xf32>
    %80 = arith.subf %76, %79 : vector<8x8xf32>
    %81 = math.exp %80 : vector<8x8xf32>
    %cst_35 = arith.constant dense<0.000000e+00> : vector<8xf32>
    %82 = vector.multi_reduction <add>, %81, %cst_35 [1] : vector<8x8xf32> to vector<8xf32>
    %83 = vector.shape_cast %82 : vector<8xf32> to vector<8x1xf32>
    %84 = vector.broadcast %83 : vector<8x1xf32> to vector<8x8xf32>
    %85 = arith.divf %81, %84 : vector<8x8xf32>
    %86 = arith.mulf %85, %24 : vector<8x8xf32>
    %cst_36 = arith.constant dense<0.000000e+00> : vector<8x8xf32>
    %87 = tpu.matmul %86, %31, %cst_36 {dimension_numbers = #tpu.dot_dimension_numbers<[1], [0], [0], [1], [0, 0, 1, 1], [], []>} : vector<8x8xf32>, vector<8x8xf32>, vector<8x8xf32> -> vector<8x8xf32>
    %cst_37 = arith.constant dense<0.000000e+00> : vector<8xf32>
    %88 = vector.multi_reduction <add>, %86, %cst_37 [1] : vector<8x8xf32> to vector<8xf32>
    %89 = vector.shape_cast %88 : vector<8xf32> to vector<8x1xf32>
    %90 = vector.broadcast %89 : vector<8x1xf32> to vector<8x8xf32>
    %91 = arith.subf %90, %87 : vector<8x8xf32>
    %92 = arith.mulf %91, %34 : vector<8x8xf32>
    %cst_38 = arith.constant 0.000000e+00 : f32
    %93 = vector.broadcast %cst_38 : f32 to vector<8x8xf32>
    %94 = arith.maximumf %92, %93 : vector<8x8xf32>
    %95 = math.sqrt %94 : vector<8x8xf32>
    %c0_39 = arith.constant 0 : index
    %96 = memref.load %arg4[%c0_39] : memref<4xf32, #tpu.memory_space<smem>>
    %97 = vector.broadcast %96 : f32 to vector<8x8xf32>
    %98 = arith.mulf %95, %97 : vector<8x8xf32>
    %99 = math.exp %98 : vector<8x8xf32>
    %cst_40 = arith.constant 9.99999974E-6 : f32
    %cst_41 = arith.constant 1.000000e+05 : f32
    %100 = vector.broadcast %cst_40 : f32 to vector<8x8xf32>
    %101 = arith.maximumf %100, %99 : vector<8x8xf32>
    %102 = vector.broadcast %cst_41 : f32 to vector<8x8xf32>
    %103 = arith.minimumf %102, %101 : vector<8x8xf32>
    %104 = arith.mulf %74, %103 : vector<8x8xf32>
    %cst_42 = arith.constant -1.000000e+32 : f32
    %105 = vector.broadcast %cst_42 : f32 to vector<8x8xf32>
    %106 = arith.select %26, %105, %104 : vector<8x8xi1>, vector<8x8xf32>
    %cst_43 = arith.constant dense<0xFF800000> : vector<8xf32>
    %107 = vector.multi_reduction <maximumf>, %106, %cst_43 [1] : vector<8x8xf32> to vector<8xf32>
    %108 = vector.shape_cast %107 : vector<8xf32> to vector<8x1xf32>
    %109 = vector.broadcast %108 : vector<8x1xf32> to vector<8x8xf32>
    %110 = arith.subf %106, %109 : vector<8x8xf32>
    %111 = math.exp %110 : vector<8x8xf32>
    %cst_44 = arith.constant dense<0.000000e+00> : vector<8xf32>
    %112 = vector.multi_reduction <add>, %111, %cst_44 [1] : vector<8x8xf32> to vector<8xf32>
    %113 = vector.shape_cast %112 : vector<8xf32> to vector<8x1xf32>
    %114 = vector.broadcast %113 : vector<8x1xf32> to vector<8x8xf32>
    %115 = arith.divf %111, %114 : vector<8x8xf32>
    %cst_45 = arith.constant 0.000000e+00 : f32
    %116 = vector.broadcast %cst_45 : f32 to vector<8x8xf32>
    %117 = arith.select %36, %116, %115 : vector<8x8xi1>, vector<8x8xf32>
    %118 = vector.broadcast %44 : vector<1x32xf32> to vector<8x32xf32>
    %119 = arith.mulf %68, %118 : vector<8x32xf32>
    %cst_46 = arith.constant dense<0.000000e+00> : vector<8x32xf32>
    %120 = tpu.matmul %117, %119, %cst_46 {dimension_numbers = #tpu.dot_dimension_numbers<[1], [0], [0], [1], [0, 0, 1, 1], [], []>} : vector<8x8xf32>, vector<8x32xf32>, vector<8x32xf32> -> vector<8x32xf32>
    %121 = arith.addf %69, %120 : vector<8x32xf32>
    %122 = vector.broadcast %51 : vector<1x32xf32> to vector<8x32xf32>
    %123 = arith.mulf %66, %122 : vector<8x32xf32>
    "tpu.trace_start"() <{level = 10 : i32, message = "qd,kd->qk"}> : () -> ()
    %cst_47 = arith.constant dense<0.000000e+00> : vector<8x8xf32>
    %124 = tpu.matmul %123, %67, %cst_47 {dimension_numbers = #tpu.dot_dimension_numbers<[1], [1], [0], [0], [0, 0, 1, 0], [], []>} : vector<8x32xf32>, vector<8x32xf32>, vector<8x8xf32> -> vector<8x8xf32>
    "tpu.trace_stop"() : () -> ()
    %cst_48 = arith.constant 0.353553385 : f32
    %125 = vector.broadcast %cst_48 : f32 to vector<8x8xf32>
    %126 = arith.mulf %124, %125 : vector<8x8xf32>
    %cst_49 = arith.constant -1.000000e+32 : f32
    %127 = vector.broadcast %cst_49 : f32 to vector<8x8xf32>
    %128 = arith.select %26, %127, %126 : vector<8x8xi1>, vector<8x8xf32>
    %cst_50 = arith.constant dense<0xFF800000> : vector<8xf32>
    %129 = vector.multi_reduction <maximumf>, %128, %cst_50 [1] : vector<8x8xf32> to vector<8xf32>
    %130 = vector.shape_cast %129 : vector<8xf32> to vector<8x1xf32>
    %131 = vector.broadcast %130 : vector<8x1xf32> to vector<8x8xf32>
    %132 = arith.subf %128, %131 : vector<8x8xf32>
    %133 = math.exp %132 : vector<8x8xf32>
    %cst_51 = arith.constant dense<0.000000e+00> : vector<8xf32>
    %134 = vector.multi_reduction <add>, %133, %cst_51 [1] : vector<8x8xf32> to vector<8xf32>
    %135 = vector.shape_cast %134 : vector<8xf32> to vector<8x1xf32>
    %136 = vector.broadcast %135 : vector<8x1xf32> to vector<8x8xf32>
    %137 = arith.divf %133, %136 : vector<8x8xf32>
    %138 = arith.mulf %137, %24 : vector<8x8xf32>
    %cst_52 = arith.constant dense<0.000000e+00> : vector<8x8xf32>
    %139 = tpu.matmul %138, %31, %cst_52 {dimension_numbers = #tpu.dot_dimension_numbers<[1], [0], [0], [1], [0, 0, 1, 1], [], []>} : vector<8x8xf32>, vector<8x8xf32>, vector<8x8xf32> -> vector<8x8xf32>
    %cst_53 = arith.constant dense<0.000000e+00> : vector<8xf32>
    %140 = vector.multi_reduction <add>, %138, %cst_53 [1] : vector<8x8xf32> to vector<8xf32>
    %141 = vector.shape_cast %140 : vector<8xf32> to vector<8x1xf32>
    %142 = vector.broadcast %141 : vector<8x1xf32> to vector<8x8xf32>
    %143 = arith.subf %142, %139 : vector<8x8xf32>
    %144 = arith.mulf %143, %34 : vector<8x8xf32>
    %cst_54 = arith.constant 0.000000e+00 : f32
    %145 = vector.broadcast %cst_54 : f32 to vector<8x8xf32>
    %146 = arith.maximumf %144, %145 : vector<8x8xf32>
    %147 = math.sqrt %146 : vector<8x8xf32>
    %c1_55 = arith.constant 1 : index
    %148 = memref.load %arg4[%c1_55] : memref<4xf32, #tpu.memory_space<smem>>
    %149 = vector.broadcast %148 : f32 to vector<8x8xf32>
    %150 = arith.mulf %147, %149 : vector<8x8xf32>
    %151 = math.exp %150 : vector<8x8xf32>
    %cst_56 = arith.constant 9.99999974E-6 : f32
    %cst_57 = arith.constant 1.000000e+05 : f32
    %152 = vector.broadcast %cst_56 : f32 to vector<8x8xf32>
    %153 = arith.maximumf %152, %151 : vector<8x8xf32>
    %154 = vector.broadcast %cst_57 : f32 to vector<8x8xf32>
    %155 = arith.minimumf %154, %153 : vector<8x8xf32>
    %156 = arith.mulf %126, %155 : vector<8x8xf32>
    %cst_58 = arith.constant -1.000000e+32 : f32
    %157 = vector.broadcast %cst_58 : f32 to vector<8x8xf32>
    %158 = arith.select %26, %157, %156 : vector<8x8xi1>, vector<8x8xf32>
    %cst_59 = arith.constant dense<0xFF800000> : vector<8xf32>
    %159 = vector.multi_reduction <maximumf>, %158, %cst_59 [1] : vector<8x8xf32> to vector<8xf32>
    %160 = vector.shape_cast %159 : vector<8xf32> to vector<8x1xf32>
    %161 = vector.broadcast %160 : vector<8x1xf32> to vector<8x8xf32>
    %162 = arith.subf %158, %161 : vector<8x8xf32>
    %163 = math.exp %162 : vector<8x8xf32>
    %cst_60 = arith.constant dense<0.000000e+00> : vector<8xf32>
    %164 = vector.multi_reduction <add>, %163, %cst_60 [1] : vector<8x8xf32> to vector<8xf32>
    %165 = vector.shape_cast %164 : vector<8xf32> to vector<8x1xf32>
    %166 = vector.broadcast %165 : vector<8x1xf32> to vector<8x8xf32>
    %167 = arith.divf %163, %166 : vector<8x8xf32>
    %cst_61 = arith.constant 0.000000e+00 : f32
    %168 = vector.broadcast %cst_61 : f32 to vector<8x8xf32>
    %169 = arith.select %36, %168, %167 : vector<8x8xi1>, vector<8x8xf32>
    %170 = vector.broadcast %51 : vector<1x32xf32> to vector<8x32xf32>
    %171 = arith.mulf %68, %170 : vector<8x32xf32>
    %cst_62 = arith.constant dense<0.000000e+00> : vector<8x32xf32>
    %172 = tpu.matmul %169, %171, %cst_62 {dimension_numbers = #tpu.dot_dimension_numbers<[1], [0], [0], [1], [0, 0, 1, 1], [], []>} : vector<8x8xf32>, vector<8x32xf32>, vector<8x32xf32> -> vector<8x32xf32>
    %173 = arith.addf %121, %172 : vector<8x32xf32>
    %174 = vector.broadcast %58 : vector<1x32xf32> to vector<8x32xf32>
    %175 = arith.mulf %66, %174 : vector<8x32xf32>
    "tpu.trace_start"() <{level = 10 : i32, message = "qd,kd->qk"}> : () -> ()
    %cst_63 = arith.constant dense<0.000000e+00> : vector<8x8xf32>
    %176 = tpu.matmul %175, %67, %cst_63 {dimension_numbers = #tpu.dot_dimension_numbers<[1], [1], [0], [0], [0, 0, 1, 0], [], []>} : vector<8x32xf32>, vector<8x32xf32>, vector<8x8xf32> -> vector<8x8xf32>
    "tpu.trace_stop"() : () -> ()
    %cst_64 = arith.constant 0.353553385 : f32
    %177 = vector.broadcast %cst_64 : f32 to vector<8x8xf32>
    %178 = arith.mulf %176, %177 : vector<8x8xf32>
    %cst_65 = arith.constant -1.000000e+32 : f32
    %179 = vector.broadcast %cst_65 : f32 to vector<8x8xf32>
    %180 = arith.select %26, %179, %178 : vector<8x8xi1>, vector<8x8xf32>
    %cst_66 = arith.constant dense<0xFF800000> : vector<8xf32>
    %181 = vector.multi_reduction <maximumf>, %180, %cst_66 [1] : vector<8x8xf32> to vector<8xf32>
    %182 = vector.shape_cast %181 : vector<8xf32> to vector<8x1xf32>
    %183 = vector.broadcast %182 : vector<8x1xf32> to vector<8x8xf32>
    %184 = arith.subf %180, %183 : vector<8x8xf32>
    %185 = math.exp %184 : vector<8x8xf32>
    %cst_67 = arith.constant dense<0.000000e+00> : vector<8xf32>
    %186 = vector.multi_reduction <add>, %185, %cst_67 [1] : vector<8x8xf32> to vector<8xf32>
    %187 = vector.shape_cast %186 : vector<8xf32> to vector<8x1xf32>
    %188 = vector.broadcast %187 : vector<8x1xf32> to vector<8x8xf32>
    %189 = arith.divf %185, %188 : vector<8x8xf32>
    %190 = arith.mulf %189, %24 : vector<8x8xf32>
    %cst_68 = arith.constant dense<0.000000e+00> : vector<8x8xf32>
    %191 = tpu.matmul %190, %31, %cst_68 {dimension_numbers = #tpu.dot_dimension_numbers<[1], [0], [0], [1], [0, 0, 1, 1], [], []>} : vector<8x8xf32>, vector<8x8xf32>, vector<8x8xf32> -> vector<8x8xf32>
    %cst_69 = arith.constant dense<0.000000e+00> : vector<8xf32>
    %192 = vector.multi_reduction <add>, %190, %cst_69 [1] : vector<8x8xf32> to vector<8xf32>
    %193 = vector.shape_cast %192 : vector<8xf32> to vector<8x1xf32>
    %194 = vector.broadcast %193 : vector<8x1xf32> to vector<8x8xf32>
    %195 = arith.subf %194, %191 : vector<8x8xf32>
    %196 = arith.mulf %195, %34 : vector<8x8xf32>
    %cst_70 = arith.constant 0.000000e+00 : f32
    %197 = vector.broadcast %cst_70 : f32 to vector<8x8xf32>
    %198 = arith.maximumf %196, %197 : vector<8x8xf32>
    %199 = math.sqrt %198 : vector<8x8xf32>
    %c2_71 = arith.constant 2 : index
    %200 = memref.load %arg4[%c2_71] : memref<4xf32, #tpu.memory_space<smem>>
    %201 = vector.broadcast %200 : f32 to vector<8x8xf32>
    %202 = arith.mulf %199, %201 : vector<8x8xf32>
    %203 = math.exp %202 : vector<8x8xf32>
    %cst_72 = arith.constant 9.99999974E-6 : f32
    %cst_73 = arith.constant 1.000000e+05 : f32
    %204 = vector.broadcast %cst_72 : f32 to vector<8x8xf32>
    %205 = arith.maximumf %204, %203 : vector<8x8xf32>
    %206 = vector.broadcast %cst_73 : f32 to vector<8x8xf32>
    %207 = arith.minimumf %206, %205 : vector<8x8xf32>
    %208 = arith.mulf %178, %207 : vector<8x8xf32>
    %cst_74 = arith.constant -1.000000e+32 : f32
    %209 = vector.broadcast %cst_74 : f32 to vector<8x8xf32>
    %210 = arith.select %26, %209, %208 : vector<8x8xi1>, vector<8x8xf32>
    %cst_75 = arith.constant dense<0xFF800000> : vector<8xf32>
    %211 = vector.multi_reduction <maximumf>, %210, %cst_75 [1] : vector<8x8xf32> to vector<8xf32>
    %212 = vector.shape_cast %211 : vector<8xf32> to vector<8x1xf32>
    %213 = vector.broadcast %212 : vector<8x1xf32> to vector<8x8xf32>
    %214 = arith.subf %210, %213 : vector<8x8xf32>
    %215 = math.exp %214 : vector<8x8xf32>
    %cst_76 = arith.constant dense<0.000000e+00> : vector<8xf32>
    %216 = vector.multi_reduction <add>, %215, %cst_76 [1] : vector<8x8xf32> to vector<8xf32>
    %217 = vector.shape_cast %216 : vector<8xf32> to vector<8x1xf32>
    %218 = vector.broadcast %217 : vector<8x1xf32> to vector<8x8xf32>
    %219 = arith.divf %215, %218 : vector<8x8xf32>
    %cst_77 = arith.constant 0.000000e+00 : f32
    %220 = vector.broadcast %cst_77 : f32 to vector<8x8xf32>
    %221 = arith.select %36, %220, %219 : vector<8x8xi1>, vector<8x8xf32>
    %222 = vector.broadcast %58 : vector<1x32xf32> to vector<8x32xf32>
    %223 = arith.mulf %68, %222 : vector<8x32xf32>
    %cst_78 = arith.constant dense<0.000000e+00> : vector<8x32xf32>
    %224 = tpu.matmul %221, %223, %cst_78 {dimension_numbers = #tpu.dot_dimension_numbers<[1], [0], [0], [1], [0, 0, 1, 1], [], []>} : vector<8x8xf32>, vector<8x32xf32>, vector<8x32xf32> -> vector<8x32xf32>
    %225 = arith.addf %173, %224 : vector<8x32xf32>
    %226 = vector.broadcast %65 : vector<1x32xf32> to vector<8x32xf32>
    %227 = arith.mulf %66, %226 : vector<8x32xf32>
    "tpu.trace_start"() <{level = 10 : i32, message = "qd,kd->qk"}> : () -> ()
    %cst_79 = arith.constant dense<0.000000e+00> : vector<8x8xf32>
    %228 = tpu.matmul %227, %67, %cst_79 {dimension_numbers = #tpu.dot_dimension_numbers<[1], [1], [0], [0], [0, 0, 1, 0], [], []>} : vector<8x32xf32>, vector<8x32xf32>, vector<8x8xf32> -> vector<8x8xf32>
    "tpu.trace_stop"() : () -> ()
    %cst_80 = arith.constant 0.353553385 : f32
    %229 = vector.broadcast %cst_80 : f32 to vector<8x8xf32>
    %230 = arith.mulf %228, %229 : vector<8x8xf32>
    %cst_81 = arith.constant -1.000000e+32 : f32
    %231 = vector.broadcast %cst_81 : f32 to vector<8x8xf32>
    %232 = arith.select %26, %231, %230 : vector<8x8xi1>, vector<8x8xf32>
    %cst_82 = arith.constant dense<0xFF800000> : vector<8xf32>
    %233 = vector.multi_reduction <maximumf>, %232, %cst_82 [1] : vector<8x8xf32> to vector<8xf32>
    %234 = vector.shape_cast %233 : vector<8xf32> to vector<8x1xf32>
    %235 = vector.broadcast %234 : vector<8x1xf32> to vector<8x8xf32>
    %236 = arith.subf %232, %235 : vector<8x8xf32>
    %237 = math.exp %236 : vector<8x8xf32>
    %cst_83 = arith.constant dense<0.000000e+00> : vector<8xf32>
    %238 = vector.multi_reduction <add>, %237, %cst_83 [1] : vector<8x8xf32> to vector<8xf32>
    %239 = vector.shape_cast %238 : vector<8xf32> to vector<8x1xf32>
    %240 = vector.broadcast %239 : vector<8x1xf32> to vector<8x8xf32>
    %241 = arith.divf %237, %240 : vector<8x8xf32>
    %242 = arith.mulf %241, %24 : vector<8x8xf32>
    %cst_84 = arith.constant dense<0.000000e+00> : vector<8x8xf32>
    %243 = tpu.matmul %242, %31, %cst_84 {dimension_numbers = #tpu.dot_dimension_numbers<[1], [0], [0], [1], [0, 0, 1, 1], [], []>} : vector<8x8xf32>, vector<8x8xf32>, vector<8x8xf32> -> vector<8x8xf32>
    %cst_85 = arith.constant dense<0.000000e+00> : vector<8xf32>
    %244 = vector.multi_reduction <add>, %242, %cst_85 [1] : vector<8x8xf32> to vector<8xf32>
    %245 = vector.shape_cast %244 : vector<8xf32> to vector<8x1xf32>
    %246 = vector.broadcast %245 : vector<8x1xf32> to vector<8x8xf32>
    %247 = arith.subf %246, %243 : vector<8x8xf32>
    %248 = arith.mulf %247, %34 : vector<8x8xf32>
    %cst_86 = arith.constant 0.000000e+00 : f32
    %249 = vector.broadcast %cst_86 : f32 to vector<8x8xf32>
    %250 = arith.maximumf %248, %249 : vector<8x8xf32>
    %251 = math.sqrt %250 : vector<8x8xf32>
    %c3 = arith.constant 3 : index
    %252 = memref.load %arg4[%c3] : memref<4xf32, #tpu.memory_space<smem>>
    %253 = vector.broadcast %252 : f32 to vector<8x8xf32>
    %254 = arith.mulf %251, %253 : vector<8x8xf32>
    %255 = math.exp %254 : vector<8x8xf32>
    %cst_87 = arith.constant 9.99999974E-6 : f32
    %cst_88 = arith.constant 1.000000e+05 : f32
    %256 = vector.broadcast %cst_87 : f32 to vector<8x8xf32>
    %257 = arith.maximumf %256, %255 : vector<8x8xf32>
    %258 = vector.broadcast %cst_88 : f32 to vector<8x8xf32>
    %259 = arith.minimumf %258, %257 : vector<8x8xf32>
    %260 = arith.mulf %230, %259 : vector<8x8xf32>
    %cst_89 = arith.constant -1.000000e+32 : f32
    %261 = vector.broadcast %cst_89 : f32 to vector<8x8xf32>
    %262 = arith.select %26, %261, %260 : vector<8x8xi1>, vector<8x8xf32>
    %cst_90 = arith.constant dense<0xFF800000> : vector<8xf32>
    %263 = vector.multi_reduction <maximumf>, %262, %cst_90 [1] : vector<8x8xf32> to vector<8xf32>
    %264 = vector.shape_cast %263 : vector<8xf32> to vector<8x1xf32>
    %265 = vector.broadcast %264 : vector<8x1xf32> to vector<8x8xf32>
    %266 = arith.subf %262, %265 : vector<8x8xf32>
    %267 = math.exp %266 : vector<8x8xf32>
    %cst_91 = arith.constant dense<0.000000e+00> : vector<8xf32>
    %268 = vector.multi_reduction <add>, %267, %cst_91 [1] : vector<8x8xf32> to vector<8xf32>
    %269 = vector.shape_cast %268 : vector<8xf32> to vector<8x1xf32>
    %270 = vector.broadcast %269 : vector<8x1xf32> to vector<8x8xf32>
    %271 = arith.divf %267, %270 : vector<8x8xf32>
    %cst_92 = arith.constant 0.000000e+00 : f32
    %272 = vector.broadcast %cst_92 : f32 to vector<8x8xf32>
    %273 = arith.select %36, %272, %271 : vector<8x8xi1>, vector<8x8xf32>
    %274 = vector.broadcast %65 : vector<1x32xf32> to vector<8x32xf32>
    %275 = arith.mulf %68, %274 : vector<8x32xf32>
    %cst_93 = arith.constant dense<0.000000e+00> : vector<8x32xf32>
    %276 = tpu.matmul %273, %275, %cst_93 {dimension_numbers = #tpu.dot_dimension_numbers<[1], [0], [0], [1], [0, 0, 1, 1], [], []>} : vector<8x8xf32>, vector<8x32xf32>, vector<8x32xf32> -> vector<8x32xf32>
    %277 = arith.addf %225, %276 : vector<8x32xf32>
    %278 = vector.extract_strided_slice %7 {offsets = [8, 0], sizes = [8, 32], strides = [1, 1]} : vector<16x32xf32> to vector<8x32xf32>
    %279 = vector.extract_strided_slice %15 {offsets = [8, 0], sizes = [8, 32], strides = [1, 1]} : vector<16x32xf32> to vector<8x32xf32>
    %280 = vector.extract_strided_slice %23 {offsets = [8, 0], sizes = [8, 32], strides = [1, 1]} : vector<16x32xf32> to vector<8x32xf32>
    %cst_94 = arith.constant 0.000000e+00 : f32
    %281 = vector.broadcast %cst_94 : f32 to vector<8x32xf32>
    %282 = vector.broadcast %44 : vector<1x32xf32> to vector<8x32xf32>
    %283 = arith.mulf %278, %282 : vector<8x32xf32>
    "tpu.trace_start"() <{level = 10 : i32, message = "qd,kd->qk"}> : () -> ()
    %cst_95 = arith.constant dense<0.000000e+00> : vector<8x8xf32>
    %284 = tpu.matmul %283, %279, %cst_95 {dimension_numbers = #tpu.dot_dimension_numbers<[1], [1], [0], [0], [0, 0, 1, 0], [], []>} : vector<8x32xf32>, vector<8x32xf32>, vector<8x8xf32> -> vector<8x8xf32>
    "tpu.trace_stop"() : () -> ()
    %cst_96 = arith.constant 0.353553385 : f32
    %285 = vector.broadcast %cst_96 : f32 to vector<8x8xf32>
    %286 = arith.mulf %284, %285 : vector<8x8xf32>
    %cst_97 = arith.constant -1.000000e+32 : f32
    %287 = vector.broadcast %cst_97 : f32 to vector<8x8xf32>
    %288 = arith.select %26, %287, %286 : vector<8x8xi1>, vector<8x8xf32>
    %cst_98 = arith.constant dense<0xFF800000> : vector<8xf32>
    %289 = vector.multi_reduction <maximumf>, %288, %cst_98 [1] : vector<8x8xf32> to vector<8xf32>
    %290 = vector.shape_cast %289 : vector<8xf32> to vector<8x1xf32>
    %291 = vector.broadcast %290 : vector<8x1xf32> to vector<8x8xf32>
    %292 = arith.subf %288, %291 : vector<8x8xf32>
    %293 = math.exp %292 : vector<8x8xf32>
    %cst_99 = arith.constant dense<0.000000e+00> : vector<8xf32>
    %294 = vector.multi_reduction <add>, %293, %cst_99 [1] : vector<8x8xf32> to vector<8xf32>
    %295 = vector.shape_cast %294 : vector<8xf32> to vector<8x1xf32>
    %296 = vector.broadcast %295 : vector<8x1xf32> to vector<8x8xf32>
    %297 = arith.divf %293, %296 : vector<8x8xf32>
    %298 = arith.mulf %297, %24 : vector<8x8xf32>
    %cst_100 = arith.constant dense<0.000000e+00> : vector<8x8xf32>
    %299 = tpu.matmul %298, %31, %cst_100 {dimension_numbers = #tpu.dot_dimension_numbers<[1], [0], [0], [1], [0, 0, 1, 1], [], []>} : vector<8x8xf32>, vector<8x8xf32>, vector<8x8xf32> -> vector<8x8xf32>
    %cst_101 = arith.constant dense<0.000000e+00> : vector<8xf32>
    %300 = vector.multi_reduction <add>, %298, %cst_101 [1] : vector<8x8xf32> to vector<8xf32>
    %301 = vector.shape_cast %300 : vector<8xf32> to vector<8x1xf32>
    %302 = vector.broadcast %301 : vector<8x1xf32> to vector<8x8xf32>
    %303 = arith.subf %302, %299 : vector<8x8xf32>
    %304 = arith.mulf %303, %34 : vector<8x8xf32>
    %cst_102 = arith.constant 0.000000e+00 : f32
    %305 = vector.broadcast %cst_102 : f32 to vector<8x8xf32>
    %306 = arith.maximumf %304, %305 : vector<8x8xf32>
    %307 = math.sqrt %306 : vector<8x8xf32>
    %c0_103 = arith.constant 0 : index
    %308 = memref.load %arg4[%c0_103] : memref<4xf32, #tpu.memory_space<smem>>
    %309 = vector.broadcast %308 : f32 to vector<8x8xf32>
    %310 = arith.mulf %307, %309 : vector<8x8xf32>
    %311 = math.exp %310 : vector<8x8xf32>
    %cst_104 = arith.constant 9.99999974E-6 : f32
    %cst_105 = arith.constant 1.000000e+05 : f32
    %312 = vector.broadcast %cst_104 : f32 to vector<8x8xf32>
    %313 = arith.maximumf %312, %311 : vector<8x8xf32>
    %314 = vector.broadcast %cst_105 : f32 to vector<8x8xf32>
    %315 = arith.minimumf %314, %313 : vector<8x8xf32>
    %316 = arith.mulf %286, %315 : vector<8x8xf32>
    %cst_106 = arith.constant -1.000000e+32 : f32
    %317 = vector.broadcast %cst_106 : f32 to vector<8x8xf32>
    %318 = arith.select %26, %317, %316 : vector<8x8xi1>, vector<8x8xf32>
    %cst_107 = arith.constant dense<0xFF800000> : vector<8xf32>
    %319 = vector.multi_reduction <maximumf>, %318, %cst_107 [1] : vector<8x8xf32> to vector<8xf32>
    %320 = vector.shape_cast %319 : vector<8xf32> to vector<8x1xf32>
    %321 = vector.broadcast %320 : vector<8x1xf32> to vector<8x8xf32>
    %322 = arith.subf %318, %321 : vector<8x8xf32>
    %323 = math.exp %322 : vector<8x8xf32>
    %cst_108 = arith.constant dense<0.000000e+00> : vector<8xf32>
    %324 = vector.multi_reduction <add>, %323, %cst_108 [1] : vector<8x8xf32> to vector<8xf32>
    %325 = vector.shape_cast %324 : vector<8xf32> to vector<8x1xf32>
    %326 = vector.broadcast %325 : vector<8x1xf32> to vector<8x8xf32>
    %327 = arith.divf %323, %326 : vector<8x8xf32>
    %cst_109 = arith.constant 0.000000e+00 : f32
    %328 = vector.broadcast %cst_109 : f32 to vector<8x8xf32>
    %329 = arith.select %36, %328, %327 : vector<8x8xi1>, vector<8x8xf32>
    %330 = vector.broadcast %44 : vector<1x32xf32> to vector<8x32xf32>
    %331 = arith.mulf %280, %330 : vector<8x32xf32>
    %cst_110 = arith.constant dense<0.000000e+00> : vector<8x32xf32>
    %332 = tpu.matmul %329, %331, %cst_110 {dimension_numbers = #tpu.dot_dimension_numbers<[1], [0], [0], [1], [0, 0, 1, 1], [], []>} : vector<8x8xf32>, vector<8x32xf32>, vector<8x32xf32> -> vector<8x32xf32>
    %333 = arith.addf %281, %332 : vector<8x32xf32>
    %334 = vector.broadcast %51 : vector<1x32xf32> to vector<8x32xf32>
    %335 = arith.mulf %278, %334 : vector<8x32xf32>
    "tpu.trace_start"() <{level = 10 : i32, message = "qd,kd->qk"}> : () -> ()
    %cst_111 = arith.constant dense<0.000000e+00> : vector<8x8xf32>
    %336 = tpu.matmul %335, %279, %cst_111 {dimension_numbers = #tpu.dot_dimension_numbers<[1], [1], [0], [0], [0, 0, 1, 0], [], []>} : vector<8x32xf32>, vector<8x32xf32>, vector<8x8xf32> -> vector<8x8xf32>
    "tpu.trace_stop"() : () -> ()
    %cst_112 = arith.constant 0.353553385 : f32
    %337 = vector.broadcast %cst_112 : f32 to vector<8x8xf32>
    %338 = arith.mulf %336, %337 : vector<8x8xf32>
    %cst_113 = arith.constant -1.000000e+32 : f32
    %339 = vector.broadcast %cst_113 : f32 to vector<8x8xf32>
    %340 = arith.select %26, %339, %338 : vector<8x8xi1>, vector<8x8xf32>
    %cst_114 = arith.constant dense<0xFF800000> : vector<8xf32>
    %341 = vector.multi_reduction <maximumf>, %340, %cst_114 [1] : vector<8x8xf32> to vector<8xf32>
    %342 = vector.shape_cast %341 : vector<8xf32> to vector<8x1xf32>
    %343 = vector.broadcast %342 : vector<8x1xf32> to vector<8x8xf32>
    %344 = arith.subf %340, %343 : vector<8x8xf32>
    %345 = math.exp %344 : vector<8x8xf32>
    %cst_115 = arith.constant dense<0.000000e+00> : vector<8xf32>
    %346 = vector.multi_reduction <add>, %345, %cst_115 [1] : vector<8x8xf32> to vector<8xf32>
    %347 = vector.shape_cast %346 : vector<8xf32> to vector<8x1xf32>
    %348 = vector.broadcast %347 : vector<8x1xf32> to vector<8x8xf32>
    %349 = arith.divf %345, %348 : vector<8x8xf32>
    %350 = arith.mulf %349, %24 : vector<8x8xf32>
    %cst_116 = arith.constant dense<0.000000e+00> : vector<8x8xf32>
    %351 = tpu.matmul %350, %31, %cst_116 {dimension_numbers = #tpu.dot_dimension_numbers<[1], [0], [0], [1], [0, 0, 1, 1], [], []>} : vector<8x8xf32>, vector<8x8xf32>, vector<8x8xf32> -> vector<8x8xf32>
    %cst_117 = arith.constant dense<0.000000e+00> : vector<8xf32>
    %352 = vector.multi_reduction <add>, %350, %cst_117 [1] : vector<8x8xf32> to vector<8xf32>
    %353 = vector.shape_cast %352 : vector<8xf32> to vector<8x1xf32>
    %354 = vector.broadcast %353 : vector<8x1xf32> to vector<8x8xf32>
    %355 = arith.subf %354, %351 : vector<8x8xf32>
    %356 = arith.mulf %355, %34 : vector<8x8xf32>
    %cst_118 = arith.constant 0.000000e+00 : f32
    %357 = vector.broadcast %cst_118 : f32 to vector<8x8xf32>
    %358 = arith.maximumf %356, %357 : vector<8x8xf32>
    %359 = math.sqrt %358 : vector<8x8xf32>
    %c1_119 = arith.constant 1 : index
    %360 = memref.load %arg4[%c1_119] : memref<4xf32, #tpu.memory_space<smem>>
    %361 = vector.broadcast %360 : f32 to vector<8x8xf32>
    %362 = arith.mulf %359, %361 : vector<8x8xf32>
    %363 = math.exp %362 : vector<8x8xf32>
    %cst_120 = arith.constant 9.99999974E-6 : f32
    %cst_121 = arith.constant 1.000000e+05 : f32
    %364 = vector.broadcast %cst_120 : f32 to vector<8x8xf32>
    %365 = arith.maximumf %364, %363 : vector<8x8xf32>
    %366 = vector.broadcast %cst_121 : f32 to vector<8x8xf32>
    %367 = arith.minimumf %366, %365 : vector<8x8xf32>
    %368 = arith.mulf %338, %367 : vector<8x8xf32>
    %cst_122 = arith.constant -1.000000e+32 : f32
    %369 = vector.broadcast %cst_122 : f32 to vector<8x8xf32>
    %370 = arith.select %26, %369, %368 : vector<8x8xi1>, vector<8x8xf32>
    %cst_123 = arith.constant dense<0xFF800000> : vector<8xf32>
    %371 = vector.multi_reduction <maximumf>, %370, %cst_123 [1] : vector<8x8xf32> to vector<8xf32>
    %372 = vector.shape_cast %371 : vector<8xf32> to vector<8x1xf32>
    %373 = vector.broadcast %372 : vector<8x1xf32> to vector<8x8xf32>
    %374 = arith.subf %370, %373 : vector<8x8xf32>
    %375 = math.exp %374 : vector<8x8xf32>
    %cst_124 = arith.constant dense<0.000000e+00> : vector<8xf32>
    %376 = vector.multi_reduction <add>, %375, %cst_124 [1] : vector<8x8xf32> to vector<8xf32>
    %377 = vector.shape_cast %376 : vector<8xf32> to vector<8x1xf32>
    %378 = vector.broadcast %377 : vector<8x1xf32> to vector<8x8xf32>
    %379 = arith.divf %375, %378 : vector<8x8xf32>
    %cst_125 = arith.constant 0.000000e+00 : f32
    %380 = vector.broadcast %cst_125 : f32 to vector<8x8xf32>
    %381 = arith.select %36, %380, %379 : vector<8x8xi1>, vector<8x8xf32>
    %382 = vector.broadcast %51 : vector<1x32xf32> to vector<8x32xf32>
    %383 = arith.mulf %280, %382 : vector<8x32xf32>
    %cst_126 = arith.constant dense<0.000000e+00> : vector<8x32xf32>
    %384 = tpu.matmul %381, %383, %cst_126 {dimension_numbers = #tpu.dot_dimension_numbers<[1], [0], [0], [1], [0, 0, 1, 1], [], []>} : vector<8x8xf32>, vector<8x32xf32>, vector<8x32xf32> -> vector<8x32xf32>
    %385 = arith.addf %333, %384 : vector<8x32xf32>
    %386 = vector.broadcast %58 : vector<1x32xf32> to vector<8x32xf32>
    %387 = arith.mulf %278, %386 : vector<8x32xf32>
    "tpu.trace_start"() <{level = 10 : i32, message = "qd,kd->qk"}> : () -> ()
    %cst_127 = arith.constant dense<0.000000e+00> : vector<8x8xf32>
    %388 = tpu.matmul %387, %279, %cst_127 {dimension_numbers = #tpu.dot_dimension_numbers<[1], [1], [0], [0], [0, 0, 1, 0], [], []>} : vector<8x32xf32>, vector<8x32xf32>, vector<8x8xf32> -> vector<8x8xf32>
    "tpu.trace_stop"() : () -> ()
    %cst_128 = arith.constant 0.353553385 : f32
    %389 = vector.broadcast %cst_128 : f32 to vector<8x8xf32>
    %390 = arith.mulf %388, %389 : vector<8x8xf32>
    %cst_129 = arith.constant -1.000000e+32 : f32
    %391 = vector.broadcast %cst_129 : f32 to vector<8x8xf32>
    %392 = arith.select %26, %391, %390 : vector<8x8xi1>, vector<8x8xf32>
    %cst_130 = arith.constant dense<0xFF800000> : vector<8xf32>
    %393 = vector.multi_reduction <maximumf>, %392, %cst_130 [1] : vector<8x8xf32> to vector<8xf32>
    %394 = vector.shape_cast %393 : vector<8xf32> to vector<8x1xf32>
    %395 = vector.broadcast %394 : vector<8x1xf32> to vector<8x8xf32>
    %396 = arith.subf %392, %395 : vector<8x8xf32>
    %397 = math.exp %396 : vector<8x8xf32>
    %cst_131 = arith.constant dense<0.000000e+00> : vector<8xf32>
    %398 = vector.multi_reduction <add>, %397, %cst_131 [1] : vector<8x8xf32> to vector<8xf32>
    %399 = vector.shape_cast %398 : vector<8xf32> to vector<8x1xf32>
    %400 = vector.broadcast %399 : vector<8x1xf32> to vector<8x8xf32>
    %401 = arith.divf %397, %400 : vector<8x8xf32>
    %402 = arith.mulf %401, %24 : vector<8x8xf32>
    %cst_132 = arith.constant dense<0.000000e+00> : vector<8x8xf32>
    %403 = tpu.matmul %402, %31, %cst_132 {dimension_numbers = #tpu.dot_dimension_numbers<[1], [0], [0], [1], [0, 0, 1, 1], [], []>} : vector<8x8xf32>, vector<8x8xf32>, vector<8x8xf32> -> vector<8x8xf32>
    %cst_133 = arith.constant dense<0.000000e+00> : vector<8xf32>
    %404 = vector.multi_reduction <add>, %402, %cst_133 [1] : vector<8x8xf32> to vector<8xf32>
    %405 = vector.shape_cast %404 : vector<8xf32> to vector<8x1xf32>
    %406 = vector.broadcast %405 : vector<8x1xf32> to vector<8x8xf32>
    %407 = arith.subf %406, %403 : vector<8x8xf32>
    %408 = arith.mulf %407, %34 : vector<8x8xf32>
    %cst_134 = arith.constant 0.000000e+00 : f32
    %409 = vector.broadcast %cst_134 : f32 to vector<8x8xf32>
    %410 = arith.maximumf %408, %409 : vector<8x8xf32>
    %411 = math.sqrt %410 : vector<8x8xf32>
    %c2_135 = arith.constant 2 : index
    %412 = memref.load %arg4[%c2_135] : memref<4xf32, #tpu.memory_space<smem>>
    %413 = vector.broadcast %412 : f32 to vector<8x8xf32>
    %414 = arith.mulf %411, %413 : vector<8x8xf32>
    %415 = math.exp %414 : vector<8x8xf32>
    %cst_136 = arith.constant 9.99999974E-6 : f32
    %cst_137 = arith.constant 1.000000e+05 : f32
    %416 = vector.broadcast %cst_136 : f32 to vector<8x8xf32>
    %417 = arith.maximumf %416, %415 : vector<8x8xf32>
    %418 = vector.broadcast %cst_137 : f32 to vector<8x8xf32>
    %419 = arith.minimumf %418, %417 : vector<8x8xf32>
    %420 = arith.mulf %390, %419 : vector<8x8xf32>
    %cst_138 = arith.constant -1.000000e+32 : f32
    %421 = vector.broadcast %cst_138 : f32 to vector<8x8xf32>
    %422 = arith.select %26, %421, %420 : vector<8x8xi1>, vector<8x8xf32>
    %cst_139 = arith.constant dense<0xFF800000> : vector<8xf32>
    %423 = vector.multi_reduction <maximumf>, %422, %cst_139 [1] : vector<8x8xf32> to vector<8xf32>
    %424 = vector.shape_cast %423 : vector<8xf32> to vector<8x1xf32>
    %425 = vector.broadcast %424 : vector<8x1xf32> to vector<8x8xf32>
    %426 = arith.subf %422, %425 : vector<8x8xf32>
    %427 = math.exp %426 : vector<8x8xf32>
    %cst_140 = arith.constant dense<0.000000e+00> : vector<8xf32>
    %428 = vector.multi_reduction <add>, %427, %cst_140 [1] : vector<8x8xf32> to vector<8xf32>
    %429 = vector.shape_cast %428 : vector<8xf32> to vector<8x1xf32>
    %430 = vector.broadcast %429 : vector<8x1xf32> to vector<8x8xf32>
    %431 = arith.divf %427, %430 : vector<8x8xf32>
    %cst_141 = arith.constant 0.000000e+00 : f32
    %432 = vector.broadcast %cst_141 : f32 to vector<8x8xf32>
    %433 = arith.select %36, %432, %431 : vector<8x8xi1>, vector<8x8xf32>
    %434 = vector.broadcast %58 : vector<1x32xf32> to vector<8x32xf32>
    %435 = arith.mulf %280, %434 : vector<8x32xf32>
    %cst_142 = arith.constant dense<0.000000e+00> : vector<8x32xf32>
    %436 = tpu.matmul %433, %435, %cst_142 {dimension_numbers = #tpu.dot_dimension_numbers<[1], [0], [0], [1], [0, 0, 1, 1], [], []>} : vector<8x8xf32>, vector<8x32xf32>, vector<8x32xf32> -> vector<8x32xf32>
    %437 = arith.addf %385, %436 : vector<8x32xf32>
    %438 = vector.broadcast %65 : vector<1x32xf32> to vector<8x32xf32>
    %439 = arith.mulf %278, %438 : vector<8x32xf32>
    "tpu.trace_start"() <{level = 10 : i32, message = "qd,kd->qk"}> : () -> ()
    %cst_143 = arith.constant dense<0.000000e+00> : vector<8x8xf32>
    %440 = tpu.matmul %439, %279, %cst_143 {dimension_numbers = #tpu.dot_dimension_numbers<[1], [1], [0], [0], [0, 0, 1, 0], [], []>} : vector<8x32xf32>, vector<8x32xf32>, vector<8x8xf32> -> vector<8x8xf32>
    "tpu.trace_stop"() : () -> ()
    %cst_144 = arith.constant 0.353553385 : f32
    %441 = vector.broadcast %cst_144 : f32 to vector<8x8xf32>
    %442 = arith.mulf %440, %441 : vector<8x8xf32>
    %cst_145 = arith.constant -1.000000e+32 : f32
    %443 = vector.broadcast %cst_145 : f32 to vector<8x8xf32>
    %444 = arith.select %26, %443, %442 : vector<8x8xi1>, vector<8x8xf32>
    %cst_146 = arith.constant dense<0xFF800000> : vector<8xf32>
    %445 = vector.multi_reduction <maximumf>, %444, %cst_146 [1] : vector<8x8xf32> to vector<8xf32>
    %446 = vector.shape_cast %445 : vector<8xf32> to vector<8x1xf32>
    %447 = vector.broadcast %446 : vector<8x1xf32> to vector<8x8xf32>
    %448 = arith.subf %444, %447 : vector<8x8xf32>
    %449 = math.exp %448 : vector<8x8xf32>
    %cst_147 = arith.constant dense<0.000000e+00> : vector<8xf32>
    %450 = vector.multi_reduction <add>, %449, %cst_147 [1] : vector<8x8xf32> to vector<8xf32>
    %451 = vector.shape_cast %450 : vector<8xf32> to vector<8x1xf32>
    %452 = vector.broadcast %451 : vector<8x1xf32> to vector<8x8xf32>
    %453 = arith.divf %449, %452 : vector<8x8xf32>
    %454 = arith.mulf %453, %24 : vector<8x8xf32>
    %cst_148 = arith.constant dense<0.000000e+00> : vector<8x8xf32>
    %455 = tpu.matmul %454, %31, %cst_148 {dimension_numbers = #tpu.dot_dimension_numbers<[1], [0], [0], [1], [0, 0, 1, 1], [], []>} : vector<8x8xf32>, vector<8x8xf32>, vector<8x8xf32> -> vector<8x8xf32>
    %cst_149 = arith.constant dense<0.000000e+00> : vector<8xf32>
    %456 = vector.multi_reduction <add>, %454, %cst_149 [1] : vector<8x8xf32> to vector<8xf32>
    %457 = vector.shape_cast %456 : vector<8xf32> to vector<8x1xf32>
    %458 = vector.broadcast %457 : vector<8x1xf32> to vector<8x8xf32>
    %459 = arith.subf %458, %455 : vector<8x8xf32>
    %460 = arith.mulf %459, %34 : vector<8x8xf32>
    %cst_150 = arith.constant 0.000000e+00 : f32
    %461 = vector.broadcast %cst_150 : f32 to vector<8x8xf32>
    %462 = arith.maximumf %460, %461 : vector<8x8xf32>
    %463 = math.sqrt %462 : vector<8x8xf32>
    %c3_151 = arith.constant 3 : index
    %464 = memref.load %arg4[%c3_151] : memref<4xf32, #tpu.memory_space<smem>>
    %465 = vector.broadcast %464 : f32 to vector<8x8xf32>
    %466 = arith.mulf %463, %465 : vector<8x8xf32>
    %467 = math.exp %466 : vector<8x8xf32>
    %cst_152 = arith.constant 9.99999974E-6 : f32
    %cst_153 = arith.constant 1.000000e+05 : f32
    %468 = vector.broadcast %cst_152 : f32 to vector<8x8xf32>
    %469 = arith.maximumf %468, %467 : vector<8x8xf32>
    %470 = vector.broadcast %cst_153 : f32 to vector<8x8xf32>
    %471 = arith.minimumf %470, %469 : vector<8x8xf32>
    %472 = arith.mulf %442, %471 : vector<8x8xf32>
    %cst_154 = arith.constant -1.000000e+32 : f32
    %473 = vector.broadcast %cst_154 : f32 to vector<8x8xf32>
    %474 = arith.select %26, %473, %472 : vector<8x8xi1>, vector<8x8xf32>
    %cst_155 = arith.constant dense<0xFF800000> : vector<8xf32>
    %475 = vector.multi_reduction <maximumf>, %474, %cst_155 [1] : vector<8x8xf32> to vector<8xf32>
    %476 = vector.shape_cast %475 : vector<8xf32> to vector<8x1xf32>
    %477 = vector.broadcast %476 : vector<8x1xf32> to vector<8x8xf32>
    %478 = arith.subf %474, %477 : vector<8x8xf32>
    %479 = math.exp %478 : vector<8x8xf32>
    %cst_156 = arith.constant dense<0.000000e+00> : vector<8xf32>
    %480 = vector.multi_reduction <add>, %479, %cst_156 [1] : vector<8x8xf32> to vector<8xf32>
    %481 = vector.shape_cast %480 : vector<8xf32> to vector<8x1xf32>
    %482 = vector.broadcast %481 : vector<8x1xf32> to vector<8x8xf32>
    %483 = arith.divf %479, %482 : vector<8x8xf32>
    %cst_157 = arith.constant 0.000000e+00 : f32
    %484 = vector.broadcast %cst_157 : f32 to vector<8x8xf32>
    %485 = arith.select %36, %484, %483 : vector<8x8xi1>, vector<8x8xf32>
    %486 = vector.broadcast %65 : vector<1x32xf32> to vector<8x32xf32>
    %487 = arith.mulf %280, %486 : vector<8x32xf32>
    %cst_158 = arith.constant dense<0.000000e+00> : vector<8x32xf32>
    %488 = tpu.matmul %485, %487, %cst_158 {dimension_numbers = #tpu.dot_dimension_numbers<[1], [0], [0], [1], [0, 0, 1, 1], [], []>} : vector<8x8xf32>, vector<8x32xf32>, vector<8x32xf32> -> vector<8x32xf32>
    %489 = arith.addf %437, %488 : vector<8x32xf32>
    %490 = tpu.concatenate %277, %489 in 0 : vector<8x32xf32>, vector<8x32xf32> -> vector<16x32xf32>
    %c3_159 = arith.constant 3 : index
    %c0_160 = arith.constant 0 : index
    %c0_161 = arith.constant 0 : index
    %491 = vector.load %arg2[%c3_159, %c0_160, %c0_161] : memref<4x32x32xf32, #tpu.memory_space<vmem>>, vector<1x32x32xf32>
    %492 = vector.shape_cast %491 : vector<1x32x32xf32> to vector<32x32xf32>
    %cst_162 = arith.constant dense<0.000000e+00> : vector<16x32xf32>
    %493 = tpu.matmul %490, %492, %cst_162 {dimension_numbers = #tpu.dot_dimension_numbers<[1], [0], [0], [1], [0, 0, 1, 1], [], []>} : vector<16x32xf32>, vector<32x32xf32>, vector<16x32xf32> -> vector<16x32xf32>
    %c3_163 = arith.constant 3 : index
    %c0_164 = arith.constant 0 : index
    %494 = vector.load %arg3[%c3_163, %c0_164] : memref<4x32xf32, #tpu.memory_space<vmem>>, vector<1x32xf32>
    %495 = vector.broadcast %494 : vector<1x32xf32> to vector<16x32xf32>
    %496 = arith.addf %493, %495 : vector<16x32xf32>
    %c0_165 = arith.constant 0 : index
    %c0_166 = arith.constant 0 : index
    %497 = vector.load %arg5[%c0_165, %c0_166] : memref<16x32xf32, #tpu.memory_space<vmem>>, vector<16x32xf32>
    tpu.vector_store %arg5[%c0_165, %c0_166], %496 {strides = array<i32>} : memref<16x32xf32, #tpu.memory_space<vmem>>, vector<16x32xf32>,
    return
  }
}

</mosaic_0001>

<bundles_post_ra>
// kernel: tpu_custom_call.1
= control target key start
LH: loop header
LB: loop body
LE: loop exit
PB: predicated region body
PF: predicated region fallthrough
CT: control target
= control target key end

     0   :  { %10 = vsyncpa [#allocation3], 0  ;;  %s2257_s0 = inlined_call_operand.hbm [shape: f32[3,16,32], index: 0, kind: input, shape index: {}]   ;;  %s2258_s1 = inlined_call_operand.hbm [shape: f32[8,8], index: 1, kind: input, shape index: {}]   ;;  %s2259_s2 = inlined_call_operand.hbm [shape: f32[4,32,32], index: 2, kind: input, shape index: {}]   ;;  %s2260_s3 = inlined_call_operand.hbm [shape: f32[4,32], index: 3, kind: input, shape index: {}]   ;;  %s2261_s4 = inlined_call_operand.vmem [shape: f32[4], index: 4, kind: input, shape index: {}]   ;;  %s2262_s5 = inlined_call_operand.hbm [shape: f32[16,32], index: 5, kind: output, shape index: {}]  }
   0x1   :  { %11 = vsyncpa [#allocation7], 0 }
   0x2   :  { %12 = vsyncpa [#allocation10], 0 }
   0x3   :  { %13 = vsyncpa [#allocation5], 0  ;;  %s33_s20 = sshll.u32 %s2258_s1, 4  ;;  %s34_s20 = int_to_ptr.hbm [resolvable:$true] %s33_s20 }
   0x4   :  { %14 = vsyncpa [#allocation4], 0  ;;  %s1831_s21 = smov [#allocation6]   ;;  %s19_s25 = sshll.u32 %s2257_s0, 4  ;;  %s20_s25 = int_to_ptr.hbm [resolvable:$true] %s19_s25 }
   0x5   :  { %s35_s22 = sshll.u32 %s1831_s21, 4  ;;  %s1832_s26 = smov [#allocation2]   ;;  %s36_s22 = int_to_ptr.vmem [resolvable:$true] %s35_s22 }
   0x6   :  { %38 = dma.hbm_to_vmem [thread:$0]  %s34_s20, 128, %s36_s22, [#allocation7]  }
   0x7   :  { %s21_s27 = sshll.u32 %s1832_s26, 4  ;;  %s1833_s28 = smov 128   ;;  %s22_s27 = int_to_ptr.vmem [resolvable:$true] %s21_s27 }
   0x8   :  { %s1834_s29 = smov 8   ;;  %s43_s6 = sshll.u32 %s2259_s2, 4  ;;  %s44_s6 = int_to_ptr.hbm [resolvable:$true] %s43_s6 }
   0x9   :  { %27 = dma.hbm_to_vmem [thread:$0]  %s20_s25, 768, %s22_s27, [#allocation3], %s1833_s28, %s1833_s28, %s1834_s29  }
   0xa   :  { %s1835_s7 = smov [#allocation8]   ;;  %s57_s10 = sshll.u32 %s2260_s3, 4  ;;  %s58_s10 = int_to_ptr.hbm [resolvable:$true] %s57_s10 }
   0xb   :  { %s45_s8 = sshll.u32 %s1835_s7, 4  ;;  %s1836_s11 = smov [#allocation9]   ;;  %s46_s8 = int_to_ptr.vmem [resolvable:$true] %s45_s8 }
   0xc   :  { %51 = dma.hbm_to_vmem [thread:$0]  %s44_s6, 2048, %s46_s8, [#allocation7], %s1833_s28, %s1833_s28, %s1834_s29  }
   0xd   :  { %s59_s12 = sshll.u32 %s1836_s11, 4  ;;  %s68_s15 = sshll.u32 %s2261_s4, 4  ;;  %s60_s12 = int_to_ptr.vmem [resolvable:$true] %s59_s12  ;;  %s69_s15 = int_to_ptr.vmem [resolvable:$true] %s68_s15 }
   0xe   :  { %62 = dma.hbm_to_vmem [thread:$0]  %s58_s10, 64, %s60_s12, [#allocation10]  }
   0xf   :  { %s1837_s2 = smov [#allocation11]  }
  0x10   :  { %71 = dma.vmem_to_smem %s69_s15, 16, %s1837_s2, [#allocation5]  }
  0x11   :  { %1821 = dma.done.wait [#allocation3], 768  }
  0x12   :  { %1822 = vsyncadd [#allocation3], 4294966528 }
  0x13   :  { %1823 = dma.done.wait [#allocation7], 2176  }
  0x14   :  { %1824 = vsyncadd [#allocation7], 4294965120 }
  0x15   :  { %1825 = dma.done.wait [#allocation10], 64  }
  0x16   :  { %1826 = vsyncadd [#allocation10], 4294967232 }
  0x17   :  { %1827 = dma.done.wait [#allocation5], 16  }
  0x18   :  { %1828 = vsyncadd [#allocation5], 4294967280 }
  0x19   :  { %92 = sfence }
  0x1a   :  { %v138_v0 = vld [vmem:[#allocation8 + $0x38] sm:$0xff]  ;;  %v137_v2 = vld [vmem:[#allocation8 + $0x30] sm:$0xff]  ;;  %v136_v4 = vld [vmem:[#allocation8 + $0x28] sm:$0xff]  ;;  %vm101_vm0 = vcmask 261120   ;;  %v211_v16 = vlaneseq  ;;  %v1838_v18 = vmov 0.0   ;;  %v1839_v24 = vmov 1.0  }
  0x1b   :  { %v98_v1 = vld [vmem:[#allocation8 + $0x18] sm:$0xff]  ;;  %159 = vmatpush.msra.mxu1 %v138_v0  ;;  %1574 = vmatpush.msra.mxu2 %v138_v0  ;;  %v97_v3 = vld [vmem:[#allocation8 + $0x10] sm:$0xff]  ;;  %v96_v5 = vld [vmem:[#allocation8 + $0x8] sm:$0xff]  ;;  %vm273_vm13 = vcmask 64512   ;;  %s2008_s3 = sld [smem:[#allocation11 + $0x1]]  ;;  %s1840_s18 = smov [#allocation12]  }
  0x1c   :  { %120 = vmatpush.msra.mxu0 %v98_v1  ;;  %v135_v6 = vld [vmem:[#allocation8 + $0x20] sm:$0xff]  ;;  %v132_v8 = vld [vmem:[#allocation2 + $0x10] sm:$0xff]  ;;  %v93_v10 = vld [vmem:[#allocation2] sm:$0xff]  ;;  %v1896_v17 = vand.u32 127, %v211_v16  ;;  %v1906_v20 = vshrl.u32 %v211_v16, 7  ;;  %s2011_s4 = sld [smem:[#allocation11 + $0x2]] }
  0x1d   :  { %160 = vmatpush.msra.mxu1 %v137_v2  ;;  %1575 = vmatpush.msra.mxu2 %v137_v2  ;;  %v95_v7 = vld [vmem:[#allocation8] sm:$0xff]  ;;  %v177_v11 = vld [vmem:[#allocation8 + $0x58] sm:$0xff]  ;;  %v176_v12 = vld [vmem:[#allocation8 + $0x50] sm:$0xff]  ;;  %s2038_s16 = sld [smem:[#allocation11]]  ;;  %s1497_s19 = sshll.u32 %s1840_s18, 4  ;;  %s1498_s19 = int_to_ptr.vmem [resolvable:$true] %s1497_s19 }
  0x1e   :  { %121 = vmatpush.msra.mxu0 %v97_v3  ;;  %v133_v9 = vld [vmem:[#allocation2 + $0x18] sm:$0xff]  ;;  %v175_v13 = vld [vmem:[#allocation8 + $0x48] sm:$0xff]  ;;  %vm229_vm1 = vcmp.ge.s32.totalorder %v1896_v17, 8  ;;  %vm230_vm2 = vcmp.lt.s32.totalorder %v1896_v17, 16  ;;  %vm234_vm3 = vcmp.ge.s32.totalorder %v1896_v17, 16  ;;  %vm235_vm5 = vcmp.lt.s32.totalorder %v1896_v17, 24 }
  0x1f   :  { %161 = vmatpush.msra.mxu1 %v136_v4  ;;  %1576 = vmatpush.msra.mxu2 %v136_v4  ;;  %v174_v14 = vld [vmem:[#allocation8 + $0x40] sm:$0xff]  ;;  %v171_v15 = vld [vmem:[#allocation2 + $0x20] sm:$0xff]  ;;  %vm231_vm4 = vmand %vm229_vm1, %vm230_vm2  ;;  %vm239_vm6 = vcmp.ge.s32.totalorder %v1896_v17, 24  ;;  %vm240_vm7 = vcmp.lt.s32.totalorder %v1896_v17, 32  ;;  %vm1914_vm10 = vcmp.le.s32.totalorder %v1906_v20, %v1896_v17  ;;  %vm225_vm11 = vcmp.lt.s32.totalorder %v1896_v17, 8  ;;  %s2151_s17 = sld [smem:[#allocation11 + $0x3]] }
  0x20   :  { %122 = vmatpush.msra.mxu0 %v96_v5  ;;  %v1904_v19 = vsel %vm231_vm4, 1.0, %v1838_v18  ;;  %vm236_vm8 = vmand %vm234_vm3, %vm235_vm5  ;;  %v1588_v25 = vld [vmem:[#allocation9 + $0x1] ss:$0 sm:$0xff]  ;;  %v1924_v26 = vld [vmem:[#allocation9] ss:$0 sm:$0xff]  ;;  %v1927_v30 = vsel %vm225_vm11, 1.0, %v1838_v18 }
  0x21   :  { %162 = vmatpush.msra.mxu1 %v135_v6  ;;  %1577 = vmatpush.msra.mxu2 %v135_v6  ;;  %v1908_v21 = vsel %vm236_vm8, 1.0, %v1838_v18  ;;  %vm241_vm9 = vmand %vm239_vm6, %vm240_vm7  ;;  %v1942_v35 = vld [vmem:[#allocation9 + $0x2] ss:$0 sm:$0xff]  ;;  %v1950_v39 = vld [vmem:[#allocation6] sm:$0xff]  ;;  %s1499_s22 = sshll.u32 %s2262_s5, 4  ;;  %s1500_s22 = int_to_ptr.hbm [resolvable:$true] %s1499_s22 }
  0x22   :  { %123 = vmatpush.msra.mxu0 %v95_v7  ;;  %1517 = vmatmul.msk.f32.vlgmr.msra.gmra.mxu1 %vm101_vm0, %v132_v8  ;;  %v1910_v22 = vsel %vm241_vm9, 1.0, %v1838_v18  ;;  %vm210_vm12 = vcmp.eq.f32.partialorder %v1950_v39, 0.0 }
  0x23   :  { %1518 = vmatmul.msk.f32.vlgmr.msra.gmra.mxu2 %vm101_vm0, %v133_v9  ;;  %1515 = vmatmul.msk.f32.vlgmr.msra.gmra.mxu0 %vm101_vm0, %v93_v10 }
  0x24   :  { %198 = vmatpush.msrb.mxu2 %v177_v11  ;;  %1532 = vmatpush.msk.msrb.mxu0 %vm1914_vm10, %v1839_v24 }
  0x26   :  { %199 = vmatpush.msrb.mxu2 %v176_v12  ;;  %1539 = vmatpush.msk.msra.mxu0 %vm1914_vm10, %v1839_v24 }
  0x28   :  { %200 = vmatpush.msrb.mxu2 %v175_v13 }
  0x2a   :  { %201 = vmatpush.msrb.mxu2 %v174_v14 }
  0x2b   :  { %1519 = vmatmul.msk.f32.vlgmr.msrb.gmra.mxu2 %vm101_vm0, %v171_v15 }
  0x9f   :  { %v164_v27 = vpop.f32.mrf.mxu1 }
  0xa0   :  { %v165_v28 = vadd.f32 %v1588_v25, %v164_v27  ;;  %v125_v29 = vpop.f32.mrf.mxu0  ;;  %v94_v27 = vld [vmem:[#allocation2 + $0x8] sm:$0xff] }
  0xa1   :  { %v1930_v31 = vadd.f32 %v1924_v26, %v125_v29  ;;  %1516 = vmatmul.msk.f32.gmra.mxu0 %vm101_vm0, %v94_v27 }
  0xa2   :  { %1526 = vmatpush.xpose.msk.msra.mxu3 %vm101_vm0, %v165_v28 }
  0xa3   :  { %v244_v32 = vmul.f32 %v1927_v30, %v1930_v31  ;;  %v375_v62 = vmul.f32 %v1904_v19, %v1930_v31  ;;  %v548_v63 = vmul.f32 %v1908_v21, %v1930_v31 }
  0xa5   :  { %1527 = vmatmul.msk.f32.vlgmr.msra.gmra.mxu3 %vm101_vm0, %v244_v32 }
  0xa6   :  { %1528 = vmatpush.msk.msrb.mxu3 %vm1914_vm10, %v1839_v24  ;;  %v167_v33 = vpop.f32.mrf.mxu2 }
  0xa7   :  { %v1940_v34 = vadd.f32 %v1588_v25, %v167_v33 }
  0xa8   :  { %1530 = vmatpush.xpose.msk.msra.mxu3 %vm101_vm0, %v165_v28 }
  0xae   :  { %v203_v36 = vpop.f32.mrf.mxu2 }
  0xaf   :  { %v1945_v37 = vadd.f32 %v1942_v35, %v203_v36 }
  0xb1   :  { %v374_v38 = vmul.f32 %v1927_v30, %v1945_v37 }
  0xb3   :  { %543 = vmatpush.msra.mxu2 %v374_v38 }
  0xb5   :  { %1543 = vmatpush.xpose.msk.msrb.mxu2 %vm101_vm0, %v165_v28 }
 0x128   :  { %v268_v40 = vpop.f32.mrf.mxu3 }
 0x129   :  { %v1953_v41 = vmul.f32 0.35355338, %v268_v40 }
 0x12b   :  { %v272_v42 = vsel %vm210_vm12, -1e+32, %v1953_v41 }
 0x12c   :  { %v274_v43 = vsel %vm273_vm13, %v272_v42, -inf }
 0x12d   :  { %275 = vmax.xlane.f32.xlu0 %v274_v43 }
 0x1a0   :  { %v276_v44 = vpop.xlane.xlu0 %275 }
 0x1a1   :  { %v277_v45 = vsub.f32 %v272_v42, %v276_v44 }
 0x1a3   :  { %v278_v46 = vmul.f32 1.442695, %v277_v45 }
 0x1a5   :  { %1592 = vpow2.f32 %v278_v46 }
 0x1ab   :  { %v1593_v47 = vpop.eup %1592 }
 0x1ac   :  { %v280_v48 = vsel %vm273_vm13, %v1593_v47, 0.0 }
 0x1ad   :  { %281 = vadd.xlane.f32.xlu0 %v280_v48 }
 0x220   :  { %v282_v49 = vpop.xlane.xlu0 %281 }
 0x221   :  { %1594 = vrcp.f32 %v282_v49  ;;  %v294_v53 = vand.u32 2147483648, %v282_v49  ;;  %v292_v55 = vand.u32 2147483647, %v282_v49  ;;  %vm288_vm15 = vweird.f32 %v282_v49 }
 0x223   :  { %v295_v57 = vor.u32 1.1754944e-38, %v294_v53  ;;  %vm293_vm2 = vcmp.eq.f32.partialorder %v292_v55, 8.507059e+37 }
 0x227   :  { %v1595_v50 = vpop.eup %1594 }
 0x228   :  { %v284_v51 = vmul.f32 %v1595_v50, %v282_v49  ;;  %vm289_vm14 = vweird.f32 %v1595_v50 }
 0x229   :  { %vm290_vm1 = vmor %vm288_vm15, %vm289_vm14 }
 0x22a   :  { %v285_v52 = vsub.f32 1.0, %v284_v51 }
 0x22c   :  { %v286_v54 = vmul.f32 %v1595_v50, %v285_v52 }
 0x22e   :  { %v287_v56 = vadd.f32 %v1595_v50, %v286_v54 }
 0x230   :  { %v291_v58 = vsel %vm290_vm1, %v1595_v50, %v287_v56 }
 0x231   :  { %v296_v59 = vsel %vm293_vm2, %v295_v57, %v291_v58 }
 0x232   :  { %v297_v60 = vmul.f32 %v1593_v47, %v296_v59 }
 0x234   :  { %v1961_v61 = vmul.f32 %v297_v60, %v1950_v39 }
 0x236   :  { %1529 = vmatmul.msk.f32.vlgmr.msrb.gmra.mxu3 %vm273_vm13, %v1961_v61 }
 0x237   :  { %1537 = vmatpush.xpose.msk.msrb.mxu3 %vm101_vm0, %v165_v28 }
 0x23e   :  { %1531 = vmatmul.msk.f32.vlgmr.msra.gmra.mxu3 %vm101_vm0, %v375_v62 }
 0x23f   :  { %1545 = vmatpush.msk.msra.mxu3 %vm1914_vm10, %v1839_v24 }
 0x246   :  { %1538 = vmatmul.msk.f32.vlgmr.msrb.gmra.mxu3 %vm101_vm0, %v548_v63 }
 0x247   :  { %1553 = vmatpush.xpose.msk.msrb.mxu3 %vm101_vm0, %v1940_v34 }
 0x2b9   :  { %v1977_v0 = vpop.f32.mrf.mxu3 }
 0x2c1   :  { %v396_v1 = vpop.f32.mrf.mxu3 }
 0x2c2   :  { %v1979_v2 = vmul.f32 0.35355338, %v396_v1  ;;  %v218_v1 = vsub.s32 %v1896_v17, %v1906_v20 }
 0x2c4   :  { %v400_v3 = vsel %vm210_vm12, -1e+32, %v1979_v2  ;;  %vm219_vm14 = vcmp.lt.s32.totalorder %v218_v1, 0 }
 0x2c5   :  { %v401_v4 = vsel %vm273_vm13, %v400_v3, -inf }
 0x2c6   :  { %402 = vmax.xlane.f32.xlu1 %v401_v4  ;;  %v220_v4 = vsub.s32 0, %v218_v1 }
 0x2c9   :  { %v569_v5 = vpop.f32.mrf.mxu3 }
 0x2ca   :  { %v1985_v6 = vmul.f32 0.35355338, %v569_v5  ;;  %v221_v5 = vsel %vm219_vm14, %v220_v4, %v218_v1 }
 0x2cc   :  { %v573_v7 = vsel %vm210_vm12, -1e+32, %v1985_v6 }
 0x2cd   :  { %v574_v8 = vsel %vm273_vm13, %v573_v7, -inf }
 0x2ce   :  { %575 = vmax.xlane.f32.xlu1 %v574_v8 }
 0x339   :  { %v403_v9 = vpop.xlane.xlu1 %402 }
 0x33a   :  { %v404_v10 = vsub.f32 %v400_v3, %v403_v9  ;;  %v2002_v3 = vpop.f32.mrf.mxu0 }
 0x33c   :  { %v405_v11 = vmul.f32 1.442695, %v404_v10 }
 0x33e   :  { %1596 = vpow2.f32 %v405_v11 }
 0x341   :  { %v576_v12 = vpop.xlane.xlu1 %575 }
 0x342   :  { %v577_v13 = vsub.f32 %v573_v7, %v576_v12  ;;  %v2004_v7 = vcvt.s32.f32 %v221_v5 }
 0x344   :  { %v1597_v14 = vpop.eup %1596  ;;  %v578_v15 = vmul.f32 1.442695, %v577_v13 }
 0x345   :  { %v407_v16 = vsel %vm273_vm13, %v1597_v14, 0.0 }
 0x346   :  { %1598 = vpow2.f32 %v578_v15  ;;  %408 = vadd.xlane.f32.xlu2 %v407_v16 }
 0x34c   :  { %v1599_v18 = vpop.eup %1598 }
 0x34d   :  { %v580_v25 = vsel %vm273_vm13, %v1599_v18, 0.0 }
 0x34e   :  { %581 = vadd.xlane.f32.xlu2 %v580_v25 }
 0x3b9   :  { %v409_v28 = vpop.xlane.xlu2 %408 }
 0x3ba   :  { %1600 = vrcp.f32 %v409_v28  ;;  %v421_v38 = vand.u32 2147483648, %v409_v28  ;;  %v419_v42 = vand.u32 2147483647, %v409_v28  ;;  %vm415_vm4 = vweird.f32 %v409_v28 }
 0x3bc   :  { %v422_v45 = vor.u32 1.1754944e-38, %v421_v38  ;;  %vm420_vm6 = vcmp.eq.f32.partialorder %v419_v42, 8.507059e+37 }
 0x3c0   :  { %v1601_v29 = vpop.eup %1600 }
 0x3c1   :  { %v411_v32 = vmul.f32 %v1601_v29, %v409_v28  ;;  %v582_v33 = vpop.xlane.xlu2 %581  ;;  %vm416_vm3 = vweird.f32 %v1601_v29 }
 0x3c2   :  { %1602 = vrcp.f32 %v582_v33  ;;  %vm417_vm5 = vmor %vm415_vm4, %vm416_vm3  ;;  %v594_v51 = vand.u32 2147483648, %v582_v33  ;;  %v592_v53 = vand.u32 2147483647, %v582_v33  ;;  %vm588_vm8 = vweird.f32 %v582_v33 }
 0x3c3   :  { %v412_v36 = vsub.f32 1.0, %v411_v32 }
 0x3c4   :  { %v595_v57 = vor.u32 1.1754944e-38, %v594_v51  ;;  %vm593_vm11 = vcmp.eq.f32.partialorder %v592_v53, 8.507059e+37  ;;  %v641_v53 = vstv %s2011_s4 }
 0x3c5   :  { %v413_v40 = vmul.f32 %v1601_v29, %v412_v36 }
 0x3c7   :  { %v414_v43 = vadd.f32 %v1601_v29, %v413_v40 }
 0x3c8   :  { %v1603_v44 = vpop.eup %1602 }
 0x3c9   :  { %v418_v46 = vsel %vm417_vm5, %v1601_v29, %v414_v43  ;;  %v584_v47 = vmul.f32 %v1603_v44, %v582_v33  ;;  %vm589_vm7 = vweird.f32 %v1603_v44  ;;  %v468_v43 = vstv %s2008_s3 }
 0x3ca   :  { %v423_v48 = vsel %vm420_vm6, %v422_v45, %v418_v46  ;;  %vm590_vm9 = vmor %vm588_vm8, %vm589_vm7 }
 0x3cb   :  { %v585_v49 = vsub.f32 1.0, %v584_v47  ;;  %v424_v50 = vmul.f32 %v1597_v14, %v423_v48 }
 0x3cd   :  { %v586_v52 = vmul.f32 %v1603_v44, %v585_v49  ;;  %v425_v54 = vmul.f32 %v424_v50, %v1950_v39 }
 0x3cf   :  { %v587_v55 = vadd.f32 %v1603_v44, %v586_v52  ;;  %1533 = vmatmul.msk.f32.vlgmr.msrb.gmra.mxu0 %vm273_vm13, %v425_v54  ;;  %v449_v56 = vsel %vm273_vm13, %v425_v54, 0.0 }
 0x3d0   :  { %450 = vadd.xlane.f32.xlu0 %v449_v56 }
 0x3d1   :  { %v591_v58 = vsel %vm590_vm9, %v1603_v44, %v587_v55 }
 0x3d2   :  { %v596_v59 = vsel %vm593_vm11, %v595_v57, %v591_v58  ;;  %vm223_vm11 = vcmp.eq.s32.totalorder %v1906_v20, 0 }
 0x3d3   :  { %v597_v60 = vmul.f32 %v1599_v18, %v596_v59 }
 0x3d5   :  { %v598_v62 = vmul.f32 %v597_v60, %v1950_v39 }
 0x3d7   :  { %1540 = vmatmul.msk.f32.vlgmr.msra.gmra.mxu0 %vm273_vm13, %v598_v62  ;;  %v622_v63 = vsel %vm273_vm13, %v598_v62, 0.0 }
 0x3d8   :  { %623 = vadd.xlane.f32.xlu1 %v622_v63 }
 0x443   :  { %v451_v8 = vpop.xlane.xlu0 %450 }
 0x44b   :  { %v624_v13 = vpop.xlane.xlu1 %623 }
 0x44c   :  { %v446_v9 = vpop.f32.mrf.mxu0 }
 0x44d   :  { %v452_v10 = vsub.f32 %v451_v8, %v446_v9 }
 0x44f   :  { %v453_v11 = vmul.f32 %v452_v10, %v2004_v7 }
 0x451   :  { %v454_v12 = vmax.f32 %v453_v11, 0.0 }
 0x453   :  { %1604 = vrsqrt.f32 %v454_v12  ;;  %vm462_vm15 = vcmp.eq.f32.partialorder %v454_v12, inf  ;;  %v465_v42 = vand.u32 2147483648, %v454_v12  ;;  %vm464_vm1 = vcmp.eq.f32.partialorder %v454_v12, 0.0 }
 0x454   :  { %v619_v14 = vpop.f32.mrf.mxu0 }
 0x455   :  { %v625_v15 = vsub.f32 %v624_v13, %v619_v14 }
 0x457   :  { %v626_v16 = vmul.f32 %v625_v15, %v2004_v7 }
 0x459   :  { %v1605_v17 = vpop.eup %1604  ;;  %v627_v18 = vmax.f32 %v626_v16, 0.0 }
 0x45a   :  { %v456_v25 = vmul.f32 %v1605_v17, %v454_v12 }
 0x45b   :  { %1606 = vrsqrt.f32 %v627_v18  ;;  %vm635_vm2 = vcmp.eq.f32.partialorder %v627_v18, inf  ;;  %v638_v52 = vand.u32 2147483648, %v627_v18  ;;  %vm637_vm3 = vcmp.eq.f32.partialorder %v627_v18, 0.0 }
 0x45c   :  { %v457_v27 = vmul.f32 %v1605_v17, %v456_v25 }
 0x45e   :  { %v458_v28 = vmul.f32 0.5, %v457_v27 }
 0x460   :  { %v459_v29 = vsub.f32 1.5, %v458_v28 }
 0x461   :  { %v1607_v32 = vpop.eup %1606 }
 0x462   :  { %v460_v33 = vmul.f32 %v1605_v17, %v459_v29  ;;  %v629_v36 = vmul.f32 %v1607_v32, %v627_v18 }
 0x464   :  { %v461_v38 = vmul.f32 %v460_v33, %v454_v12  ;;  %v630_v40 = vmul.f32 %v1607_v32, %v629_v36 }
 0x466   :  { %v463_v44 = vsel %vm462_vm15, %v454_v12, %v461_v38  ;;  %v631_v45 = vmul.f32 0.5, %v630_v40 }
 0x467   :  { %v466_v46 = vsel %vm464_vm1, %v465_v42, %v463_v44 }
 0x468   :  { %v469_v47 = vmul.f32 %v468_v43, %v466_v46  ;;  %v632_v48 = vsub.f32 1.5, %v631_v45  ;;  %v341_v46 = vstv %s2038_s16 }
 0x46a   :  { %v470_v49 = vmul.f32 1.442695, %v469_v47  ;;  %v633_v50 = vmul.f32 %v1607_v32, %v632_v48 }
 0x46c   :  { %1608 = vpow2.f32 %v470_v49  ;;  %v634_v51 = vmul.f32 %v633_v50, %v627_v18 }
 0x46e   :  { %v636_v54 = vsel %vm635_vm2, %v627_v18, %v634_v51 }
 0x46f   :  { %v639_v55 = vsel %vm637_vm3, %v638_v52, %v636_v54 }
 0x470   :  { %v642_v56 = vmul.f32 %v641_v53, %v639_v55 }
 0x472   :  { %v1609_v57 = vpop.eup %1608  ;;  %v643_v58 = vmul.f32 1.442695, %v642_v56 }
 0x473   :  { %v472_v59 = vmax.f32 %v1609_v57, 1e-05 }
 0x474   :  { %1610 = vpow2.f32 %v643_v58  ;;  %v501_v58 = vmul.f32 %v1904_v19, %v1945_v37 }
 0x475   :  { %v473_v60 = vmin.f32 %v472_v59, 100000.0  ;;  %v674_v59 = vmul.f32 %v1908_v21, %v1945_v37 }
 0x476   :  { %520 = vmatpush.msrb.mxu1 %v501_v58 }
 0x477   :  { %v474_v62 = vmul.f32 %v473_v60, %v1979_v2  ;;  %v322_v2 = vsel %vm273_vm13, %v1961_v61, 0.0  ;;  %v825_v60 = vmul.f32 %v1910_v22, %v1945_v37 }
 0x478   :  { %693 = vmatpush.msra.mxu1 %v674_v59 }
 0x479   :  { %v475_v63 = vsel %vm210_vm12, -1e+32, %v474_v62  ;;  %844 = vmatpush.msrb.mxu0 %v825_v60 }
 0x47a   :  { %v1611_v1 = vpop.eup %1610  ;;  %v476_v4 = vsel %vm273_vm13, %v475_v63, -inf }
 0x47b   :  { %477 = vmax.xlane.f32.xlu2 %v476_v4  ;;  %v645_v5 = vmax.f32 %v1611_v1, 1e-05  ;;  %1555 = vmatpush.msk.msra.mxu0 %vm1914_vm10, %v1839_v24 }
 0x47d   :  { %v646_v8 = vmin.f32 %v645_v5, 100000.0 }
 0x47f   :  { %v647_v9 = vmul.f32 %v646_v8, %v1985_v6 }
 0x481   :  { %v648_v10 = vsel %vm210_vm12, -1e+32, %v647_v9 }
 0x482   :  { %v649_v11 = vsel %vm273_vm13, %v648_v10, -inf }
 0x483   :  { %650 = vmax.xlane.f32.xlu0 %v649_v11 }
 0x48b   :  { %323 = vadd.xlane.f32.xlu0 %v322_v2 }
 0x4ee   :  { %v478_v12 = vpop.xlane.xlu2 %477 }
 0x4ef   :  { %v479_v13 = vsub.f32 %v475_v63, %v478_v12 }
 0x4f1   :  { %v480_v14 = vmul.f32 1.442695, %v479_v13 }
 0x4f3   :  { %1612 = vpow2.f32 %v480_v14 }
 0x4f6   :  { %v651_v15 = vpop.xlane.xlu0 %650 }
 0x4f7   :  { %v652_v16 = vsub.f32 %v648_v10, %v651_v15 }
 0x4f9   :  { %v2028_v17 = vpop.eup %1612  ;;  %v653_v18 = vmul.f32 1.442695, %v652_v16 }
 0x4fa   :  { %v482_v6 = vsel %vm273_vm13, %v2028_v17, 0.0 }
 0x4fb   :  { %1614 = vpow2.f32 %v653_v18  ;;  %483 = vadd.xlane.f32.xlu1 %v482_v6 }
 0x4fe   :  { %v324_v25 = vpop.xlane.xlu0 %323 }
 0x4ff   :  { %v325_v27 = vsub.f32 %v324_v25, %v1977_v0 }
 0x501   :  { %v2033_v28 = vpop.eup %1614  ;;  %v326_v61 = vmul.f32 %v325_v27, %v2004_v7 }
 0x502   :  { %v655_v29 = vsel %vm273_vm13, %v2033_v28, 0.0 }
 0x503   :  { %v327_v32 = vmax.f32 %v326_v61, 0.0  ;;  %656 = vadd.xlane.f32.xlu2 %v655_v29 }
 0x505   :  { %1616 = vrsqrt.f32 %v327_v32  ;;  %vm335_vm4 = vcmp.eq.f32.partialorder %v327_v32, inf  ;;  %v338_v45 = vand.u32 2147483648, %v327_v32  ;;  %vm337_vm5 = vcmp.eq.f32.partialorder %v327_v32, 0.0 }
 0x50b   :  { %v1617_v33 = vpop.eup %1616 }
 0x50c   :  { %v329_v36 = vmul.f32 %v1617_v33, %v327_v32 }
 0x50e   :  { %v330_v38 = vmul.f32 %v1617_v33, %v329_v36  ;;  %v2069_v36 = vadd.f32 %v1924_v26, %v2002_v3 }
 0x510   :  { %v331_v40 = vmul.f32 0.5, %v330_v38  ;;  %v850_v38 = vmul.f32 %v1927_v30, %v2069_v36 }
 0x512   :  { %v332_v42 = vsub.f32 1.5, %v331_v40 }
 0x514   :  { %v333_v0 = vmul.f32 %v1617_v33, %v332_v42 }
 0x516   :  { %v334_v44 = vmul.f32 %v333_v0, %v327_v32 }
 0x518   :  { %v336_v47 = vsel %vm335_vm4, %v327_v32, %v334_v44 }
 0x519   :  { %v339_v48 = vsel %vm337_vm5, %v338_v45, %v336_v47 }
 0x51a   :  { %v342_v49 = vmul.f32 %v341_v46, %v339_v48  ;;  %v172_v48 = vld [vmem:[#allocation2 + $0x28] sm:$0xff] }
 0x51b   :  { %1520 = vmatmul.msk.f32.gmra.mxu2 %vm101_vm0, %v172_v48 }
 0x51c   :  { %v343_v50 = vmul.f32 1.442695, %v342_v49 }
 0x51e   :  { %1618 = vpow2.f32 %v343_v50 }
 0x524   :  { %v1619_v51 = vpop.eup %1618 }
 0x525   :  { %v345_v52 = vmax.f32 %v1619_v51, 1e-05 }
 0x527   :  { %v346_v54 = vmin.f32 %v345_v52, 100000.0 }
 0x529   :  { %v347_v55 = vmul.f32 %v346_v54, %v1953_v41 }
 0x52b   :  { %v348_v56 = vsel %vm210_vm12, -1e+32, %v347_v55 }
 0x52c   :  { %v349_v57 = vsel %vm273_vm13, %v348_v56, -inf }
 0x52d   :  { %350 = vmax.xlane.f32.xlu1 %v349_v57 }
 0x56e   :  { %v484_v41 = vpop.xlane.xlu1 %483 }
 0x56f   :  { %1620 = vrcp.f32 %v484_v41  ;;  %v496_v5 = vand.u32 2147483648, %v484_v41  ;;  %v494_v9 = vand.u32 2147483647, %v484_v41  ;;  %vm490_vm7 = vweird.f32 %v484_v41 }
 0x571   :  { %v497_v11 = vor.u32 1.1754944e-38, %v496_v5  ;;  %vm495_vm9 = vcmp.eq.f32.partialorder %v494_v9, 8.507059e+37 }
 0x575   :  { %v1621_v62 = vpop.eup %1620 }
 0x576   :  { %v486_v63 = vmul.f32 %v1621_v62, %v484_v41  ;;  %v657_v1 = vpop.xlane.xlu2 %656  ;;  %vm491_vm6 = vweird.f32 %v1621_v62 }
 0x577   :  { %1622 = vrcp.f32 %v657_v1  ;;  %vm492_vm8 = vmor %vm490_vm7, %vm491_vm6  ;;  %v669_v16 = vand.u32 2147483648, %v657_v1  ;;  %v667_v6 = vand.u32 2147483647, %v657_v1  ;;  %vm663_vm15 = vweird.f32 %v657_v1 }
 0x578   :  { %v487_v4 = vsub.f32 1.0, %v486_v63 }
 0x579   :  { %v670_v61 = vor.u32 1.1754944e-38, %v669_v16  ;;  %vm668_vm2 = vcmp.eq.f32.partialorder %v667_v6, 8.507059e+37 }
 0x57a   :  { %v488_v8 = vmul.f32 %v1621_v62, %v487_v4  ;;  %v699_v4 = vmul.f32 %v1910_v22, %v1930_v31 }
 0x57c   :  { %v489_v10 = vadd.f32 %v1621_v62, %v488_v8 }
 0x57d   :  { %v1623_v37 = vpop.eup %1622 }
 0x57e   :  { %v659_v2 = vmul.f32 %v1623_v37, %v657_v1  ;;  %v493_v12 = vsel %vm492_vm8, %v1621_v62, %v489_v10  ;;  %vm664_vm14 = vweird.f32 %v1623_v37 }
 0x57f   :  { %v498_v13 = vsel %vm495_vm9, %v497_v11, %v493_v12  ;;  %vm665_vm1 = vmor %vm663_vm15, %vm664_vm14 }
 0x580   :  { %v660_v14 = vsub.f32 1.0, %v659_v2  ;;  %v499_v15 = vmul.f32 %v2028_v17, %v498_v13 }
 0x582   :  { %v661_v18 = vmul.f32 %v1623_v37, %v660_v14  ;;  %v500_v25 = vsel %vm223_vm11, 0.0, %v499_v15 }
 0x583   :  { %1535 = vmatmul.msk.f32.vlgmr.msrb.gmra.mxu1 %vm273_vm13, %v500_v25 }
 0x584   :  { %v662_v27 = vadd.f32 %v1623_v37, %v661_v18  ;;  %1549 = vmatpush.xpose.msk.msrb.mxu1 %vm101_vm0, %v1940_v34 }
 0x586   :  { %v666_v29 = vsel %vm665_vm1, %v1623_v37, %v662_v27 }
 0x587   :  { %v671_v32 = vsel %vm668_vm2, %v670_v61, %v666_v29 }
 0x588   :  { %v672_v17 = vmul.f32 %v2033_v28, %v671_v32 }
 0x58a   :  { %v673_v33 = vsel %vm223_vm11, 0.0, %v672_v17 }
 0x58b   :  { %1542 = vmatmul.msk.f32.vlgmr.msra.gmra.mxu1 %vm273_vm13, %v673_v33 }
 0x593   :  { %1550 = vmatmul.msk.f32.vlgmr.msrb.gmra.mxu1 %vm101_vm0, %v850_v38 }
 0x59e   :  { %v206_v11 = vpop.f32.mrf.mxu2 }
 0x59f   :  { %v2105_v15 = vadd.f32 %v1942_v35, %v206_v11 }
 0x5a0   :  { %v351_v40 = vpop.xlane.xlu1 %350 }
 0x5a1   :  { %v352_v42 = vsub.f32 %v348_v56, %v351_v40  ;;  %v979_v16 = vmul.f32 %v1927_v30, %v2105_v15 }
 0x5a3   :  { %v353_v0 = vmul.f32 1.442695, %v352_v42 }
 0x5a5   :  { %1624 = vpow2.f32 %v353_v0  ;;  %v1106_v0 = vmul.f32 %v1904_v19, %v2105_v15 }
 0x5a7   :  { %1125 = vmatpush.msra.mxu1 %v1106_v0 }
 0x5ab   :  { %v1625_v44 = vpop.eup %1624 }
 0x5ac   :  { %v355_v28 = vsel %vm273_vm13, %v1625_v44, 0.0 }
 0x5ad   :  { %356 = vadd.xlane.f32.xlu0 %v355_v28 }
 0x600   :  { %v2075_v45 = vpop.f32.mrf.mxu1 }
 0x608   :  { %v2077_v47 = vpop.f32.mrf.mxu1 }
 0x610   :  { %v874_v26 = vpop.f32.mrf.mxu1 }
 0x611   :  { %v2080_v3 = vmul.f32 0.35355338, %v874_v26 }
 0x613   :  { %v878_v49 = vsel %vm210_vm12, -1e+32, %v2080_v3 }
 0x614   :  { %v879_v50 = vsel %vm273_vm13, %v878_v49, -inf }
 0x615   :  { %880 = vmax.xlane.f32.xlu2 %v879_v50 }
 0x620   :  { %v357_v51 = vpop.xlane.xlu0 %356 }
 0x621   :  { %1626 = vrcp.f32 %v357_v51  ;;  %v369_v56 = vand.u32 2147483648, %v357_v51  ;;  %v367_v58 = vand.u32 2147483647, %v357_v51  ;;  %vm363_vm4 = vweird.f32 %v357_v51 }
 0x623   :  { %v370_v60 = vor.u32 1.1754944e-38, %v369_v56  ;;  %vm368_vm6 = vcmp.eq.f32.partialorder %v367_v58, 8.507059e+37 }
 0x627   :  { %v1627_v52 = vpop.eup %1626 }
 0x628   :  { %v359_v54 = vmul.f32 %v1627_v52, %v357_v51  ;;  %vm364_vm3 = vweird.f32 %v1627_v52 }
 0x629   :  { %vm365_vm5 = vmor %vm363_vm4, %vm364_vm3 }
 0x62a   :  { %v360_v55 = vsub.f32 1.0, %v359_v54 }
 0x62c   :  { %v361_v57 = vmul.f32 %v1627_v52, %v360_v55 }
 0x62e   :  { %v362_v59 = vadd.f32 %v1627_v52, %v361_v57 }
 0x630   :  { %v366_v41 = vsel %vm365_vm5, %v1627_v52, %v362_v59 }
 0x631   :  { %v371_v62 = vsel %vm368_vm6, %v370_v60, %v366_v41 }
 0x632   :  { %v372_v63 = vmul.f32 %v1625_v44, %v371_v62  ;;  %v1279_v44 = vmul.f32 %v1908_v21, %v2105_v15 }
 0x634   :  { %v373_v1 = vsel %vm223_vm11, 0.0, %v372_v63  ;;  %1298 = vmatpush.msrb.mxu1 %v1279_v44 }
 0x635   :  { %1536 = vmatmul.msk.f32.vlgmr.msra.gmra.mxu2 %vm273_vm13, %v373_v1 }
 0x636   :  { %1551 = vmatpush.msk.msra.mxu2 %vm1914_vm10, %v1839_v24 }
 0x63d   :  { %1544 = vmatmul.msk.f32.vlgmr.msrb.gmra.mxu2 %vm101_vm0, %v699_v4 }
 0x63e   :  { %1148 = vmatpush.msrb.mxu2 %v979_v16 }
 0x688   :  { %v881_v5 = vpop.xlane.xlu2 %880 }
 0x689   :  { %v882_v8 = vsub.f32 %v878_v49, %v881_v5 }
 0x68b   :  { %v883_v9 = vmul.f32 1.442695, %v882_v8 }
 0x68d   :  { %1628 = vpow2.f32 %v883_v9 }
 0x693   :  { %v1629_v10 = vpop.eup %1628 }
 0x694   :  { %v885_v37 = vsel %vm273_vm13, %v1629_v10, 0.0 }
 0x695   :  { %886 = vadd.xlane.f32.xlu1 %v885_v37 }
 0x6b8   :  { %v2096_v2 = vpop.f32.mrf.mxu2 }
 0x6c0   :  { %v720_v12 = vpop.f32.mrf.mxu2 }
 0x6c1   :  { %v2098_v13 = vmul.f32 0.35355338, %v720_v12 }
 0x6c3   :  { %v724_v31 = vsel %vm210_vm12, -1e+32, %v2098_v13 }
 0x6c4   :  { %v725_v14 = vsel %vm273_vm13, %v724_v31, -inf }
 0x6c5   :  { %726 = vmax.xlane.f32.xlu0 %v725_v14 }
 0x708   :  { %v887_v18 = vpop.xlane.xlu1 %886 }
 0x709   :  { %1630 = vrcp.f32 %v887_v18  ;;  %v899_v61 = vand.u32 2147483648, %v887_v18  ;;  %v897_v32 = vand.u32 2147483647, %v887_v18  ;;  %vm893_vm8 = vweird.f32 %v887_v18 }
 0x70b   :  { %v900_v33 = vor.u32 1.1754944e-38, %v899_v61  ;;  %vm898_vm14 = vcmp.eq.f32.partialorder %v897_v32, 8.507059e+37 }
 0x70f   :  { %v1631_v6 = vpop.eup %1630 }
 0x710   :  { %v889_v25 = vmul.f32 %v1631_v6, %v887_v18  ;;  %vm894_vm7 = vweird.f32 %v1631_v6 }
 0x711   :  { %vm895_vm9 = vmor %vm893_vm8, %vm894_vm7 }
 0x712   :  { %v890_v27 = vsub.f32 1.0, %v889_v25 }
 0x714   :  { %v891_v29 = vmul.f32 %v1631_v6, %v890_v27 }
 0x716   :  { %v892_v17 = vadd.f32 %v1631_v6, %v891_v29 }
 0x718   :  { %v896_v38 = vsel %vm895_vm9, %v1631_v6, %v892_v17 }
 0x719   :  { %v901_v35 = vsel %vm898_vm14, %v900_v33, %v896_v38 }
 0x71a   :  { %v902_v40 = vmul.f32 %v1629_v10, %v901_v35 }
 0x71c   :  { %v903_v30 = vmul.f32 %v902_v40, %v1950_v39  ;;  %v980_v40 = vmul.f32 %v1904_v19, %v2069_v36 }
 0x71e   :  { %1552 = vmatmul.msk.f32.vlgmr.msra.gmra.mxu2 %vm273_vm13, %v903_v30  ;;  %v927_v42 = vsel %vm273_vm13, %v903_v30, 0.0 }
 0x71f   :  { %1566 = vmatpush.xpose.msk.msra.mxu2 %vm101_vm0, %v1940_v34  ;;  %928 = vadd.xlane.f32.xlu2 %v927_v42 }
 0x738   :  { %v727_v28 = vpop.xlane.xlu0 %726 }
 0x739   :  { %v728_v48 = vsub.f32 %v724_v31, %v727_v28 }
 0x73b   :  { %v729_v26 = vmul.f32 1.442695, %v728_v48 }
 0x73d   :  { %1632 = vpow2.f32 %v729_v26 }
 0x743   :  { %v1633_v49 = vpop.eup %1632 }
 0x744   :  { %v731_v50 = vsel %vm273_vm13, %v1633_v49, 0.0 }
 0x745   :  { %732 = vadd.xlane.f32.xlu2 %v731_v50 }
 0x792   :  { %v929_v51 = vpop.xlane.xlu2 %928 }
 0x7a1   :  { %v924_v52 = vpop.f32.mrf.mxu2 }
 0x7a2   :  { %v930_v54 = vsub.f32 %v929_v51, %v924_v52 }
 0x7a4   :  { %v931_v55 = vmul.f32 %v930_v54, %v2004_v7 }
 0x7a6   :  { %v932_v56 = vmax.f32 %v931_v55, 0.0 }
 0x7a8   :  { %1634 = vrsqrt.f32 %v932_v56  ;;  %vm940_vm15 = vcmp.eq.f32.partialorder %v932_v56, inf  ;;  %v943_v4 = vand.u32 2147483648, %v932_v56  ;;  %vm942_vm1 = vcmp.eq.f32.partialorder %v932_v56, 0.0 }
 0x7ae   :  { %v1635_v57 = vpop.eup %1634 }
 0x7af   :  { %v934_v58 = vmul.f32 %v1635_v57, %v932_v56 }
 0x7b1   :  { %v935_v59 = vmul.f32 %v1635_v57, %v934_v58 }
 0x7b3   :  { %v936_v60 = vmul.f32 0.5, %v935_v59 }
 0x7b5   :  { %v937_v41 = vsub.f32 1.5, %v936_v60 }
 0x7b7   :  { %v938_v62 = vmul.f32 %v1635_v57, %v937_v41 }
 0x7b8   :  { %v733_v63 = vpop.xlane.xlu2 %732 }
 0x7b9   :  { %1636 = vrcp.f32 %v733_v63  ;;  %v939_v1 = vmul.f32 %v938_v62, %v932_v56  ;;  %v745_v31 = vand.u32 2147483648, %v733_v63  ;;  %v743_v16 = vand.u32 2147483647, %v733_v63 }
 0x7ba   :  { %vm739_vm3 = vweird.f32 %v733_v63 }
 0x7bb   :  { %v941_v5 = vsel %vm940_vm15, %v932_v56, %v939_v1  ;;  %v746_v6 = vor.u32 1.1754944e-38, %v745_v31  ;;  %vm744_vm5 = vcmp.eq.f32.partialorder %v743_v16, 8.507059e+37 }
 0x7bc   :  { %v944_v8 = vsel %vm942_vm1, %v943_v4, %v941_v5 }
 0x7bd   :  { %v947_v9 = vmul.f32 %v944_v8, %v341_v46 }
 0x7bf   :  { %v1637_v10 = vpop.eup %1636  ;;  %v948_v11 = vmul.f32 1.442695, %v947_v9 }
 0x7c0   :  { %v735_v37 = vmul.f32 %v1637_v10, %v733_v63  ;;  %vm740_vm2 = vweird.f32 %v1637_v10  ;;  %v792_v63 = vstv %s2151_s17 }
 0x7c1   :  { %1638 = vpow2.f32 %v948_v11  ;;  %vm741_vm4 = vmor %vm739_vm3, %vm740_vm2 }
 0x7c2   :  { %v736_v12 = vsub.f32 1.0, %v735_v37 }
 0x7c4   :  { %v737_v14 = vmul.f32 %v1637_v10, %v736_v12 }
 0x7c6   :  { %v738_v18 = vadd.f32 %v1637_v10, %v737_v14 }
 0x7c7   :  { %v1639_v25 = vpop.eup %1638 }
 0x7c8   :  { %v742_v27 = vsel %vm741_vm4, %v1637_v10, %v738_v18  ;;  %v950_v29 = vmax.f32 %v1639_v25, 1e-05 }
 0x7c9   :  { %v747_v61 = vsel %vm744_vm5, %v746_v6, %v742_v27 }
 0x7ca   :  { %v748_v32 = vmul.f32 %v1633_v49, %v747_v61  ;;  %v951_v46 = vmin.f32 %v950_v29, 100000.0 }
 0x7cc   :  { %v749_v17 = vmul.f32 %v748_v32, %v1950_v39  ;;  %v952_v33 = vmul.f32 %v951_v46, %v2080_v3 }
 0x7ce   :  { %1546 = vmatmul.msk.f32.vlgmr.msra.gmra.mxu3 %vm273_vm13, %v749_v17  ;;  %v953_v38 = vsel %vm210_vm12, -1e+32, %v952_v33  ;;  %v773_v3 = vsel %vm273_vm13, %v749_v17, 0.0 }
 0x7cf   :  { %1560 = vmatpush.xpose.msk.msra.mxu3 %vm101_vm0, %v1940_v34  ;;  %v954_v35 = vsel %vm273_vm13, %v953_v38, -inf  ;;  %v1153_v34 = vmul.f32 %v1908_v21, %v2069_v36 }
 0x7d0   :  { %955 = vmax.xlane.f32.xlu1 %v954_v35 }
 0x7d6   :  { %1554 = vmatmul.msk.f32.vlgmr.msrb.gmra.mxu3 %vm101_vm0, %v980_v40 }
 0x7d7   :  { %1568 = vmatpush.msk.msrb.mxu3 %vm1914_vm10, %v1839_v24 }
 0x7d8   :  { %774 = vadd.xlane.f32.xlu1 %v773_v3 }
 0x7de   :  { %1561 = vmatmul.msk.f32.vlgmr.msra.gmra.mxu3 %vm101_vm0, %v1153_v34  ;;  %v1304_v34 = vmul.f32 %v1910_v22, %v2069_v36 }
 0x843   :  { %v956_v30 = vpop.xlane.xlu1 %955 }
 0x844   :  { %v957_v42 = vsub.f32 %v953_v38, %v956_v30 }
 0x846   :  { %v958_v0 = vmul.f32 1.442695, %v957_v42 }
 0x848   :  { %1640 = vpow2.f32 %v958_v0 }
 0x84b   :  { %v775_v28 = vpop.xlane.xlu1 %774 }
 0x84e   :  { %v1641_v44 = vpop.eup %1640 }
 0x84f   :  { %v960_v19 = vsel %vm273_vm13, %v1641_v44, 0.0 }
 0x850   :  { %961 = vadd.xlane.f32.xlu0 %v960_v19 }
 0x851   :  { %v770_v48 = vpop.f32.mrf.mxu3 }
 0x852   :  { %v776_v26 = vsub.f32 %v775_v28, %v770_v48 }
 0x854   :  { %v777_v49 = vmul.f32 %v776_v26, %v2004_v7 }
 0x856   :  { %v778_v50 = vmax.f32 %v777_v49, 0.0 }
 0x858   :  { %1642 = vrsqrt.f32 %v778_v50  ;;  %vm786_vm6 = vcmp.eq.f32.partialorder %v778_v50, inf  ;;  %v789_v62 = vand.u32 2147483648, %v778_v50  ;;  %vm788_vm7 = vcmp.eq.f32.partialorder %v778_v50, 0.0 }
 0x859   :  { %v1001_v51 = vpop.f32.mrf.mxu3 }
 0x85a   :  { %v2142_v52 = vmul.f32 0.35355338, %v1001_v51 }
 0x85c   :  { %v2147_v21 = vsel %vm210_vm12, -1e+32, %v2142_v52 }
 0x85d   :  { %v1006_v54 = vsel %vm273_vm13, %v2147_v21, -inf }
 0x85e   :  { %v1643_v55 = vpop.eup %1642  ;;  %1007 = vmax.xlane.f32.xlu0 %v1006_v54 }
 0x85f   :  { %v780_v56 = vmul.f32 %v1643_v55, %v778_v50 }
 0x861   :  { %v781_v57 = vmul.f32 %v1643_v55, %v780_v56  ;;  %v1174_v12 = vpop.f32.mrf.mxu3 }
 0x862   :  { %v2160_v16 = vmul.f32 0.35355338, %v1174_v12 }
 0x863   :  { %v782_v58 = vmul.f32 0.5, %v781_v57 }
 0x864   :  { %v1178_v18 = vsel %vm210_vm12, -1e+32, %v2160_v16 }
 0x865   :  { %v783_v59 = vsub.f32 1.5, %v782_v58  ;;  %v1179_v6 = vsel %vm273_vm13, %v1178_v18, -inf }
 0x867   :  { %v784_v60 = vmul.f32 %v1643_v55, %v783_v59 }
 0x869   :  { %v785_v41 = vmul.f32 %v784_v60, %v778_v50 }
 0x86b   :  { %v787_v1 = vsel %vm786_vm6, %v778_v50, %v785_v41 }
 0x86c   :  { %v790_v4 = vsel %vm788_vm7, %v789_v62, %v787_v1 }
 0x86d   :  { %v793_v5 = vmul.f32 %v792_v63, %v790_v4 }
 0x86f   :  { %v794_v8 = vmul.f32 1.442695, %v793_v5 }
 0x871   :  { %1644 = vpow2.f32 %v794_v8 }
 0x877   :  { %v1645_v9 = vpop.eup %1644 }
 0x878   :  { %v796_v10 = vmax.f32 %v1645_v9, 1e-05 }
 0x87a   :  { %v797_v37 = vmin.f32 %v796_v10, 100000.0 }
 0x87c   :  { %v798_v11 = vmul.f32 %v797_v37, %v2098_v13 }
 0x87e   :  { %v799_v31 = vsel %vm210_vm12, -1e+32, %v798_v11 }
 0x87f   :  { %v800_v14 = vsel %vm273_vm13, %v799_v31, -inf }
 0x880   :  { %801 = vmax.xlane.f32.xlu2 %v800_v14 }
 0x888   :  { %1180 = vmax.xlane.f32.xlu2 %v1179_v6 }
 0x8c3   :  { %v962_v25 = vpop.xlane.xlu0 %961 }
 0x8c4   :  { %1646 = vrcp.f32 %v962_v25  ;;  %v974_v29 = vand.u32 2147483648, %v962_v25  ;;  %v972_v46 = vand.u32 2147483647, %v962_v25  ;;  %vm968_vm9 = vweird.f32 %v962_v25 }
 0x8c6   :  { %v975_v33 = vor.u32 1.1754944e-38, %v974_v29  ;;  %vm973_vm15 = vcmp.eq.f32.partialorder %v972_v46, 8.507059e+37 }
 0x8ca   :  { %v1647_v27 = vpop.eup %1646 }
 0x8cb   :  { %v964_v13 = vmul.f32 %v1647_v27, %v962_v25  ;;  %vm969_vm8 = vweird.f32 %v1647_v27 }
 0x8cc   :  { %vm970_vm14 = vmor %vm968_vm9, %vm969_vm8 }
 0x8cd   :  { %v965_v61 = vsub.f32 1.0, %v964_v13 }
 0x8cf   :  { %v966_v32 = vmul.f32 %v1647_v27, %v965_v61 }
 0x8d1   :  { %v967_v17 = vadd.f32 %v1647_v27, %v966_v32  ;;  %v1008_v51 = vpop.xlane.xlu0 %1007 }
 0x8d2   :  { %v1009_v54 = vsub.f32 %v2147_v21, %v1008_v51 }
 0x8d3   :  { %v971_v38 = vsel %vm970_vm14, %v1647_v27, %v967_v17 }
 0x8d4   :  { %v976_v35 = vsel %vm973_vm15, %v975_v33, %v971_v38  ;;  %v1010_v55 = vmul.f32 1.442695, %v1009_v54 }
 0x8d5   :  { %v977_v40 = vmul.f32 %v1641_v44, %v976_v35 }
 0x8d7   :  { %v978_v3 = vsel %vm223_vm11, 0.0, %v977_v40 }
 0x8d8   :  { %1559 = vmatmul.msk.f32.vlgmr.msrb.gmra.mxu2 %vm273_vm13, %v978_v3 }
 0x8e0   :  { %1567 = vmatmul.msk.f32.vlgmr.msra.gmra.mxu2 %vm101_vm0, %v1304_v34 }
 0x8f3   :  { %v802_v30 = vpop.xlane.xlu2 %801 }
 0x8f4   :  { %v803_v42 = vsub.f32 %v799_v31, %v802_v30 }
 0x8f6   :  { %v804_v0 = vmul.f32 1.442695, %v803_v42 }
 0x8f8   :  { %1648 = vpow2.f32 %v804_v0  ;;  %v1688_v0 = vld [vmem:[#allocation6] sm:$0xff] }
 0x8fb   :  { %v1181_v19 = vpop.xlane.xlu2 %1180 }
 0x8fc   :  { %v1182_v28 = vsub.f32 %v1178_v18, %v1181_v19 }
 0x8fe   :  { %v1649_v48 = vpop.eup %1648  ;;  %v1183_v26 = vmul.f32 1.442695, %v1182_v28 }
 0x8ff   :  { %v806_v44 = vsel %vm273_vm13, %v1649_v48, 0.0 }
 0x900   :  { %1650 = vpow2.f32 %v1183_v26  ;;  %807 = vadd.xlane.f32.xlu0 %v806_v44 }
 0x901   :  { %1652 = vpow2.f32 %v1010_v55 }
 0x906   :  { %v1651_v49 = vpop.eup %1650 }
 0x907   :  { %v1185_v50 = vsel %vm273_vm13, %v1651_v49, 0.0  ;;  %v2183_v60 = vpop.eup %1652 }
 0x908   :  { %1186 = vadd.xlane.f32.xlu0 %v1185_v50  ;;  %v1012_v41 = vsel %vm273_vm13, %v2183_v60, 0.0 }
 0x95b   :  { %v2174_v36 = vpop.f32.mrf.mxu2 }
 0x963   :  { %v1325_v56 = vpop.f32.mrf.mxu2 }
 0x964   :  { %v2177_v57 = vmul.f32 0.35355338, %v1325_v56 }
 0x966   :  { %v1329_v58 = vsel %vm210_vm12, -1e+32, %v2177_v57 }
 0x967   :  { %v1330_v59 = vsel %vm273_vm13, %v1329_v58, -inf }
 0x968   :  { %1331 = vmax.xlane.f32.xlu1 %v1330_v59  ;;  %v1430_v59 = vmul.f32 %v1910_v22, %v2105_v15 }
 0x970   :  { %1013 = vadd.xlane.f32.xlu1 %v1012_v41 }
 0x973   :  { %v808_v62 = vpop.xlane.xlu0 %807 }
 0x974   :  { %1654 = vrcp.f32 %v808_v62  ;;  %v820_v5 = vand.u32 2147483648, %v808_v62  ;;  %v818_v9 = vand.u32 2147483647, %v808_v62  ;;  %vm814_vm2 = vweird.f32 %v808_v62 }
 0x976   :  { %v821_v37 = vor.u32 1.1754944e-38, %v820_v5  ;;  %vm819_vm4 = vcmp.eq.f32.partialorder %v818_v9, 8.507059e+37 }
 0x97a   :  { %v1655_v21 = vpop.eup %1654 }
 0x97b   :  { %v810_v1 = vmul.f32 %v1655_v21, %v808_v62  ;;  %vm815_vm1 = vweird.f32 %v1655_v21  ;;  %v1187_v18 = vpop.xlane.xlu0 %1186 }
 0x97c   :  { %vm816_vm3 = vmor %vm814_vm2, %vm815_vm1  ;;  %1656 = vrcp.f32 %v1187_v18  ;;  %v1199_v46 = vand.u32 2147483648, %v1187_v18  ;;  %vm1193_vm6 = vweird.f32 %v1187_v18  ;;  %v1197_v33 = vand.u32 2147483647, %v1187_v18 }
 0x97d   :  { %v811_v4 = vsub.f32 1.0, %v810_v1 }
 0x97e   :  { %v1200_v35 = vor.u32 1.1754944e-38, %v1199_v46 }
 0x97f   :  { %v812_v8 = vmul.f32 %v1655_v21, %v811_v4 }
 0x981   :  { %v813_v10 = vadd.f32 %v1655_v21, %v812_v8 }
 0x982   :  { %v1657_v6 = vpop.eup %1656 }
 0x983   :  { %v817_v11 = vsel %vm816_vm3, %v1655_v21, %v813_v10  ;;  %v1189_v25 = vmul.f32 %v1657_v6, %v1187_v18  ;;  %vm1194_vm5 = vweird.f32 %v1657_v6 }
 0x984   :  { %v822_v12 = vsel %vm819_vm4, %v821_v37, %v817_v11  ;;  %vm1195_vm7 = vmor %vm1193_vm6, %vm1194_vm5 }
 0x985   :  { %v823_v31 = vmul.f32 %v1649_v48, %v822_v12  ;;  %v1190_v27 = vsub.f32 1.0, %v1189_v25 }
 0x987   :  { %v824_v14 = vsel %vm223_vm11, 0.0, %v823_v31  ;;  %v1191_v13 = vmul.f32 %v1657_v6, %v1190_v27 }
 0x988   :  { %1548 = vmatmul.msk.f32.vlgmr.msrb.gmra.mxu0 %vm273_vm13, %v824_v14 }
 0x989   :  { %1562 = vmatpush.msk.msrb.mxu0 %vm1914_vm10, %v1839_v24  ;;  %v1192_v32 = vadd.f32 %v1657_v6, %v1191_v13  ;;  %vm1198_vm10 = vcmp.eq.f32.partialorder %v1197_v33, 8.507059e+37 }
 0x98b   :  { %v1196_v38 = vsel %vm1195_vm7, %v1657_v6, %v1192_v32 }
 0x98c   :  { %v1201_v24 = vsel %vm1198_vm10, %v1200_v35, %v1196_v38 }
 0x98d   :  { %v1202_v34 = vmul.f32 %v1651_v49, %v1201_v24 }
 0x98f   :  { %v1203_v19 = vmul.f32 %v1688_v0, %v1202_v34 }
 0x991   :  { %v1227_v50 = vsel %vm273_vm13, %v1203_v19, 0.0 }
 0x9db   :  { %v1332_v61 = vpop.xlane.xlu1 %1331 }
 0x9dc   :  { %v1333_v29 = vsub.f32 %v1329_v58, %v1332_v61 }
 0x9de   :  { %v1334_v17 = vmul.f32 1.442695, %v1333_v29 }
 0x9e0   :  { %1658 = vpow2.f32 %v1334_v17 }
 0x9e3   :  { %v1014_v23 = vpop.xlane.xlu1 %1013 }
 0x9e4   :  { %1660 = vrcp.f32 %v1014_v23  ;;  %v1026_v48 = vand.u32 2147483648, %v1014_v23  ;;  %v1024_v44 = vand.u32 2147483647, %v1014_v23  ;;  %vm1020_vm9 = vweird.f32 %v1014_v23 }
 0x9e6   :  { %v1659_v40 = vpop.eup %1658  ;;  %v1027_v54 = vor.u32 1.1754944e-38, %v1026_v48  ;;  %vm1025_vm15 = vcmp.eq.f32.partialorder %v1024_v44, 8.507059e+37 }
 0x9e7   :  { %v1336_v3 = vsel %vm273_vm13, %v1659_v40, 0.0 }
 0x9e8   :  { %1337 = vadd.xlane.f32.xlu2 %v1336_v3 }
 0x9ea   :  { %v1661_v30 = vpop.eup %1660 }
 0x9eb   :  { %v1016_v42 = vmul.f32 %v1661_v30, %v1014_v23  ;;  %vm1021_vm8 = vweird.f32 %v1661_v30 }
 0x9ec   :  { %vm1022_vm14 = vmor %vm1020_vm9, %vm1021_vm8 }
 0x9ed   :  { %v1017_v28 = vsub.f32 1.0, %v1016_v42 }
 0x9ef   :  { %v1018_v26 = vmul.f32 %v1661_v30, %v1017_v28 }
 0x9f0   :  { %1228 = vadd.xlane.f32.xlu2 %v1227_v50 }
 0x9f1   :  { %v1019_v51 = vadd.f32 %v1661_v30, %v1018_v26 }
 0x9f3   :  { %v1023_v55 = vsel %vm1022_vm14, %v1661_v30, %v1019_v51 }
 0x9f4   :  { %v1028_v49 = vsel %vm1025_vm15, %v1027_v54, %v1023_v55 }
 0x9f5   :  { %v1029_v56 = vmul.f32 %v2183_v60, %v1028_v49 }
 0x9f7   :  { %v1030_v58 = vmul.f32 %v1688_v0, %v1029_v56 }
 0x9f9   :  { %1556 = vmatmul.msk.f32.vlgmr.msra.gmra.mxu0 %vm273_vm13, %v1030_v58  ;;  %v1054_v41 = vsel %vm273_vm13, %v1030_v58, 0.0 }
 0x9fa   :  { %1449 = vmatpush.msra.mxu0 %v1430_v59  ;;  %1055 = vadd.xlane.f32.xlu1 %v1054_v41 }
 0xa01   :  { %1563 = vmatmul.msk.f32.vlgmr.msrb.gmra.mxu0 %vm273_vm13, %v1203_v19 }
 0xa05   :  { %v2201_v11 = vpop.f32.mrf.mxu0 }
 0xa5b   :  { %v1338_v62 = vpop.xlane.xlu2 %1337 }
 0xa5c   :  { %1662 = vrcp.f32 %v1338_v62  ;;  %v1350_v5 = vand.u32 2147483648, %v1338_v62  ;;  %v1348_v60 = vand.u32 2147483647, %v1338_v62  ;;  %vm1344_vm2 = vweird.f32 %v1338_v62 }
 0xa5e   :  { %v1351_v22 = vor.u32 1.1754944e-38, %v1350_v5  ;;  %vm1349_vm4 = vcmp.eq.f32.partialorder %v1348_v60, 8.507059e+37 }
 0xa62   :  { %v1663_v21 = vpop.eup %1662 }
 0xa63   :  { %v1340_v1 = vmul.f32 %v1663_v21, %v1338_v62  ;;  %vm1345_vm1 = vweird.f32 %v1663_v21  ;;  %v1229_v13 = vpop.xlane.xlu2 %1228 }
 0xa64   :  { %vm1346_vm3 = vmor %vm1344_vm2, %vm1345_vm1 }
 0xa65   :  { %v1341_v4 = vsub.f32 1.0, %v1340_v1 }
 0xa67   :  { %v1342_v8 = vmul.f32 %v1663_v21, %v1341_v4 }
 0xa69   :  { %v1343_v9 = vadd.f32 %v1663_v21, %v1342_v8 }
 0xa6b   :  { %v1347_v15 = vsel %vm1346_vm3, %v1663_v21, %v1343_v9 }
 0xa6c   :  { %v1352_v10 = vsel %vm1349_vm4, %v1351_v22, %v1347_v15 }
 0xa6d   :  { %v1353_v37 = vmul.f32 %v1659_v40, %v1352_v10  ;;  %v1056_v14 = vpop.xlane.xlu1 %1055 }
 0xa6f   :  { %v1354_v12 = vmul.f32 %v1688_v0, %v1353_v37 }
 0xa71   :  { %1569 = vmatmul.msk.f32.vlgmr.msrb.gmra.mxu3 %vm273_vm13, %v1354_v12  ;;  %v1378_v31 = vsel %vm273_vm13, %v1354_v12, 0.0 }
 0xa72   :  { %1379 = vadd.xlane.f32.xlu0 %v1378_v31 }
 0xa76   :  { %v1051_v18 = vpop.f32.mrf.mxu0 }
 0xa77   :  { %v1057_v6 = vsub.f32 %v1056_v14, %v1051_v18 }
 0xa79   :  { %v1058_v25 = vmul.f32 %v1057_v6, %v2004_v7 }
 0xa7b   :  { %v1059_v27 = vmax.f32 %v1058_v25, 0.0 }
 0xa7d   :  { %1664 = vrsqrt.f32 %v1059_v27  ;;  %vm1067_vm5 = vcmp.eq.f32.partialorder %v1059_v27, inf  ;;  %v1070_v42 = vand.u32 2147483648, %v1059_v27  ;;  %vm1069_vm6 = vcmp.eq.f32.partialorder %v1059_v27, 0.0 }
 0xa7e   :  { %v1224_v61 = vpop.f32.mrf.mxu0 }
 0xa7f   :  { %v1230_v29 = vsub.f32 %v1229_v13, %v1224_v61 }
 0xa81   :  { %v1231_v32 = vmul.f32 %v1230_v29, %v2004_v7 }
 0xa83   :  { %v1665_v46 = vpop.eup %1664  ;;  %v1232_v17 = vmax.f32 %v1231_v32, 0.0 }
 0xa84   :  { %v1061_v33 = vmul.f32 %v1665_v46, %v1059_v27 }
 0xa85   :  { %1666 = vrsqrt.f32 %v1232_v17  ;;  %vm1240_vm7 = vcmp.eq.f32.partialorder %v1232_v17, inf  ;;  %v1243_v54 = vand.u32 2147483648, %v1232_v17  ;;  %vm1242_vm10 = vcmp.eq.f32.partialorder %v1232_v17, 0.0 }
 0xa86   :  { %v1062_v38 = vmul.f32 %v1665_v46, %v1061_v33 }
 0xa88   :  { %v1063_v35 = vmul.f32 0.5, %v1062_v38 }
 0xa8a   :  { %v1064_v23 = vsub.f32 1.5, %v1063_v35 }
 0xa8b   :  { %v1667_v24 = vpop.eup %1666 }
 0xa8c   :  { %v1065_v40 = vmul.f32 %v1665_v46, %v1064_v23  ;;  %v1234_v3 = vmul.f32 %v1667_v24, %v1232_v17 }
 0xa8e   :  { %v1066_v34 = vmul.f32 %v1065_v40, %v1059_v27  ;;  %v1235_v30 = vmul.f32 %v1667_v24, %v1234_v3 }
 0xa90   :  { %v1068_v0 = vsel %vm1067_vm5, %v1059_v27, %v1066_v34  ;;  %v1236_v19 = vmul.f32 0.5, %v1235_v30 }
 0xa91   :  { %v1071_v28 = vsel %vm1069_vm6, %v1070_v42, %v1068_v0 }
 0xa92   :  { %v1074_v48 = vmul.f32 %v1071_v28, %v468_v43  ;;  %v1237_v26 = vsub.f32 1.5, %v1236_v19 }
 0xa94   :  { %v1075_v44 = vmul.f32 1.442695, %v1074_v48  ;;  %v1238_v50 = vmul.f32 %v1667_v24, %v1237_v26 }
 0xa96   :  { %1668 = vpow2.f32 %v1075_v44  ;;  %v1239_v51 = vmul.f32 %v1238_v50, %v1232_v17 }
 0xa98   :  { %v1241_v55 = vsel %vm1240_vm7, %v1232_v17, %v1239_v51 }
 0xa99   :  { %v1244_v49 = vsel %vm1242_vm10, %v1243_v54, %v1241_v55 }
 0xa9a   :  { %v1247_v56 = vmul.f32 %v1244_v49, %v641_v53 }
 0xa9c   :  { %v1669_v58 = vpop.eup %1668  ;;  %v1248_v59 = vmul.f32 1.442695, %v1247_v56 }
 0xa9d   :  { %v1077_v41 = vmax.f32 %v1669_v58, 1e-05 }
 0xa9e   :  { %1670 = vpow2.f32 %v1248_v59 }
 0xa9f   :  { %v1078_v62 = vmin.f32 %v1077_v41, 100000.0 }
 0xaa1   :  { %v1079_v21 = vmul.f32 %v1078_v62, %v2142_v52 }
 0xaa3   :  { %v1080_v43 = vsel %vm210_vm12, -1e+32, %v1079_v21 }
 0xaa4   :  { %v1671_v1 = vpop.eup %1670  ;;  %v1081_v4 = vsel %vm273_vm13, %v1080_v43, -inf }
 0xaa5   :  { %1082 = vmax.xlane.f32.xlu1 %v1081_v4  ;;  %v1250_v5 = vmax.f32 %v1671_v1, 1e-05 }
 0xaa7   :  { %v1251_v8 = vmin.f32 %v1250_v5, 100000.0 }
 0xaa9   :  { %v1252_v60 = vmul.f32 %v1251_v8, %v2160_v16 }
 0xaab   :  { %v1253_v53 = vsel %vm210_vm12, -1e+32, %v1252_v60  ;;  %v1459_v60 = vld [vmem:[#allocation8 + $0x78] sm:$0xff] }
 0xaac   :  { %v1254_v9 = vsel %vm273_vm13, %v1253_v53, -inf }
 0xaad   :  { %1255 = vmax.xlane.f32.xlu2 %v1254_v9 }
 0xae5   :  { %v1380_v22 = vpop.xlane.xlu0 %1379 }
 0xaf4   :  { %v1375_v15 = vpop.f32.mrf.mxu3 }
 0xaf5   :  { %v1381_v52 = vsub.f32 %v1380_v22, %v1375_v15  ;;  %v1458_v15 = vld [vmem:[#allocation8 + $0x70] sm:$0xff] }
 0xaf7   :  { %v1382_v10 = vmul.f32 %v1381_v52, %v2004_v7 }
 0xaf9   :  { %v1383_v37 = vmax.f32 %v1382_v10, 0.0 }
 0xafb   :  { %1672 = vrsqrt.f32 %v1383_v37  ;;  %vm1391_vm8 = vcmp.eq.f32.partialorder %v1383_v37, inf  ;;  %v1394_v27 = vand.u32 2147483648, %v1383_v37  ;;  %vm1393_vm9 = vcmp.eq.f32.partialorder %v1383_v37, 0.0 }
 0xb01   :  { %v1673_v12 = vpop.eup %1672 }
 0xb02   :  { %v1385_v31 = vmul.f32 %v1673_v12, %v1383_v37 }
 0xb04   :  { %v1386_v14 = vmul.f32 %v1673_v12, %v1385_v31 }
 0xb06   :  { %v1387_v18 = vmul.f32 0.5, %v1386_v14  ;;  %v1456_v14 = vld [vmem:[#allocation8 + $0x60] sm:$0xff] }
 0xb08   :  { %v1388_v6 = vsub.f32 1.5, %v1387_v18 }
 0xb0a   :  { %v1389_v16 = vmul.f32 %v1673_v12, %v1388_v6 }
 0xb0c   :  { %v1390_v25 = vmul.f32 %v1389_v16, %v1383_v37  ;;  %v546_v16 = vadd.f32 %v2096_v2, %v2075_v45 }
 0xb0e   :  { %v1392_v13 = vsel %vm1391_vm8, %v1383_v37, %v1390_v25  ;;  %v1457_v37 = vld [vmem:[#allocation8 + $0x68] sm:$0xff]  ;;  %v698_v25 = vadd.f32 %v2077_v47, %v546_v16 }
 0xb0f   :  { %v1395_v61 = vsel %vm1393_vm9, %v1394_v27, %v1392_v13 }
 0xb10   :  { %v1398_v29 = vmul.f32 %v1395_v61, %v792_v63  ;;  %v849_v27 = vadd.f32 %v2201_v11, %v698_v25 }
 0xb12   :  { %v1399_v32 = vmul.f32 1.442695, %v1398_v29 }
 0xb14   :  { %1674 = vpow2.f32 %v1399_v32 }
 0xb18   :  { %v1083_v46 = vpop.xlane.xlu1 %1082 }
 0xb19   :  { %v1084_v7 = vsub.f32 %v1080_v43, %v1083_v46 }
 0xb1a   :  { %v1675_v17 = vpop.eup %1674 }
 0xb1b   :  { %v1085_v33 = vmul.f32 1.442695, %v1084_v7  ;;  %v1401_v38 = vmax.f32 %v1675_v17, 1e-05 }
 0xb1d   :  { %1676 = vpow2.f32 %v1085_v33  ;;  %v1402_v35 = vmin.f32 %v1401_v38, 100000.0 }
 0xb1f   :  { %v1403_v23 = vmul.f32 %v1402_v35, %v2177_v57 }
 0xb20   :  { %v1256_v24 = vpop.xlane.xlu2 %1255 }
 0xb21   :  { %v1257_v40 = vsub.f32 %v1253_v53, %v1256_v24  ;;  %v1404_v3 = vsel %vm210_vm12, -1e+32, %v1403_v23 }
 0xb22   :  { %v1405_v34 = vsel %vm273_vm13, %v1404_v3, -inf }
 0xb23   :  { %v1677_v30 = vpop.eup %1676  ;;  %v1258_v63 = vmul.f32 1.442695, %v1257_v40  ;;  %1406 = vmax.xlane.f32.xlu0 %v1405_v34 }
 0xb24   :  { %v1087_v42 = vsel %vm273_vm13, %v1677_v30, 0.0 }
 0xb25   :  { %1678 = vpow2.f32 %v1258_v63  ;;  %1088 = vadd.xlane.f32.xlu1 %v1087_v42 }
 0xb2b   :  { %v1679_v0 = vpop.eup %1678 }
 0xb2c   :  { %v1260_v19 = vsel %vm273_vm13, %v1679_v0, 0.0 }
 0xb2d   :  { %1261 = vadd.xlane.f32.xlu2 %v1260_v19 }
 0xb96   :  { %v1407_v28 = vpop.xlane.xlu0 %1406 }
 0xb97   :  { %v1408_v57 = vsub.f32 %v1404_v3, %v1407_v28  ;;  %v1591_v3 = vld [vmem:[#allocation9 + $0x3] ss:$0 sm:$0xff] }
 0xb98   :  { %v1089_v48 = vpop.xlane.xlu1 %1088 }
 0xb99   :  { %v1409_v26 = vmul.f32 1.442695, %v1408_v57  ;;  %1680 = vrcp.f32 %v1089_v48  ;;  %v1101_v49 = vand.u32 2147483648, %v1089_v48  ;;  %v1099_v58 = vand.u32 2147483647, %v1089_v48 }
 0xb9a   :  { %vm1095_vm14 = vweird.f32 %v1089_v48 }
 0xb9b   :  { %1682 = vpow2.f32 %v1409_v26  ;;  %v1102_v62 = vor.u32 1.1754944e-38, %v1101_v49  ;;  %vm1100_vm1 = vcmp.eq.f32.partialorder %v1099_v58, 8.507059e+37 }
 0xb9f   :  { %v1681_v39 = vpop.eup %1680 }
 0xba0   :  { %v1091_v44 = vmul.f32 %v1681_v39, %v1089_v48  ;;  %v1262_v50 = vpop.xlane.xlu2 %1261  ;;  %vm1096_vm12 = vweird.f32 %v1681_v39 }
 0xba1   :  { %v2228_v51 = vpop.eup %1682  ;;  %1684 = vrcp.f32 %v1262_v50  ;;  %vm1097_vm15 = vmor %vm1095_vm14, %vm1096_vm12  ;;  %v1274_v8 = vand.u32 2147483648, %v1262_v50  ;;  %v1272_v9 = vand.u32 2147483647, %v1262_v50  ;;  %vm1268_vm3 = vweird.f32 %v1262_v50 }
 0xba2   :  { %v1092_v54 = vsub.f32 1.0, %v1091_v44  ;;  %v1411_v55 = vsel %vm273_vm13, %v2228_v51, 0.0 }
 0xba3   :  { %1412 = vadd.xlane.f32.xlu0 %v1411_v55  ;;  %v1275_v10 = vor.u32 1.1754944e-38, %v1274_v8  ;;  %vm1273_vm5 = vcmp.eq.f32.partialorder %v1272_v9, 8.507059e+37 }
 0xba4   :  { %v1093_v56 = vmul.f32 %v1681_v39, %v1092_v54 }
 0xba6   :  { %v1094_v59 = vadd.f32 %v1681_v39, %v1093_v56 }
 0xba7   :  { %v1685_v41 = vpop.eup %1684 }
 0xba8   :  { %v1098_v21 = vsel %vm1097_vm15, %v1681_v39, %v1094_v59  ;;  %v1264_v43 = vmul.f32 %v1685_v41, %v1262_v50  ;;  %vm1269_vm2 = vweird.f32 %v1685_v41 }
 0xba9   :  { %v1103_v1 = vsel %vm1100_vm1, %v1102_v62, %v1098_v21  ;;  %vm1270_vm4 = vmor %vm1268_vm3, %vm1269_vm2 }
 0xbaa   :  { %v1265_v4 = vsub.f32 1.0, %v1264_v43  ;;  %v1104_v5 = vmul.f32 %v1677_v30, %v1103_v1 }
 0xbac   :  { %v1266_v53 = vmul.f32 %v1685_v41, %v1265_v4  ;;  %v1105_v22 = vsel %vm223_vm11, 0.0, %v1104_v5 }
 0xbad   :  { %1558 = vmatmul.msk.f32.vlgmr.msra.gmra.mxu1 %vm273_vm13, %v1105_v22 }
 0xbae   :  { %v1267_v52 = vadd.f32 %v1685_v41, %v1266_v53  ;;  %1480 = vmatpush.msra.mxu1 %v1459_v60 }
 0xbb0   :  { %v1271_v12 = vsel %vm1270_vm4, %v1685_v41, %v1267_v52  ;;  %1481 = vmatpush.msra.mxu1 %v1458_v15 }
 0xbb1   :  { %v1276_v31 = vsel %vm1273_vm5, %v1275_v10, %v1271_v12 }
 0xbb2   :  { %v1277_v18 = vmul.f32 %v1679_v0, %v1276_v31  ;;  %1482 = vmatpush.msra.mxu1 %v1457_v37 }
 0xbb4   :  { %v1278_v6 = vsel %vm223_vm11, 0.0, %v1277_v18  ;;  %1483 = vmatpush.msra.mxu1 %v1456_v14 }
 0xbb5   :  { %1565 = vmatmul.msk.f32.vlgmr.msrb.gmra.mxu1 %vm273_vm13, %v1278_v6 }
 0xbbd   :  { %1572 = vmatmul.msk.f32.vlgmr.msra.gmra.mxu1 %vm101_vm0, %v849_v27 }
 0xc16   :  { %v1413_v13 = vpop.xlane.xlu0 %1412 }
 0xc17   :  { %1686 = vrcp.f32 %v1413_v13  ;;  %v1425_v46 = vand.u32 2147483648, %v1413_v13  ;;  %v1423_v17 = vand.u32 2147483647, %v1413_v13  ;;  %vm1419_vm7 = vweird.f32 %v1413_v13 }
 0xc19   :  { %v1426_v45 = vor.u32 1.1754944e-38, %v1425_v46  ;;  %vm1424_vm8 = vcmp.eq.f32.partialorder %v1423_v17, 8.507059e+37 }
 0xc1d   :  { %v1687_v61 = vpop.eup %1686 }
 0xc1e   :  { %v1415_v29 = vmul.f32 %v1687_v61, %v1413_v13  ;;  %vm1420_vm6 = vweird.f32 %v1687_v61 }
 0xc1f   :  { %vm1421_vm10 = vmor %vm1419_vm7, %vm1420_vm6 }
 0xc20   :  { %v1416_v32 = vsub.f32 1.0, %v1415_v29 }
 0xc22   :  { %v1417_v7 = vmul.f32 %v1687_v61, %v1416_v32 }
 0xc24   :  { %v1418_v33 = vadd.f32 %v1687_v61, %v1417_v7 }
 0xc26   :  { %v1422_v2 = vsel %vm1421_vm10, %v1687_v61, %v1418_v33 }
 0xc27   :  { %v1427_v47 = vsel %vm1424_vm8, %v1426_v45, %v1422_v2 }
 0xc28   :  { %v1428_v11 = vmul.f32 %v2228_v51, %v1427_v47 }
 0xc2a   :  { %v1127_v38 = vpop.f32.mrf.mxu1  ;;  %v1429_v35 = vsel %vm223_vm11, 0.0, %v1428_v11 }
 0xc2b   :  { %1571 = vmatmul.msk.f32.vlgmr.msra.gmra.mxu0 %vm273_vm13, %v1429_v35  ;;  %v1151_v23 = vadd.f32 %v2174_v36, %v1127_v38 }
 0xc32   :  { %v1300_v24 = vpop.f32.mrf.mxu1 }
 0xc33   :  { %v1303_v40 = vadd.f32 %v1300_v24, %v1151_v23 }
 0xc3a   :  { %v1485_v34 = vpop.f32.mrf.mxu1 }
 0xc3b   :  { %v1486_v30 = vadd.f32 %v1591_v3, %v1485_v34 }
 0xc3d   :  { %1491 = vst.msk [vmem:[#allocation12] sm:$0xff] %vm101_vm0, %v1486_v30 }
 0xca8   :  { %v1451_v63 = vpop.f32.mrf.mxu0 }
 0xca9   :  { %v1454_v42 = vadd.f32 %v1451_v63, %v1303_v40 }
 0xcab   :  { %1573 = vmatmul.msk.f32.gmra.mxu1 %vm101_vm0, %v1454_v42 }
 0xd28   :  { %v1488_v20 = vpop.f32.mrf.mxu1 }
 0xd29   :  { %v1489_v0 = vadd.f32 %v1591_v3, %v1488_v20 }
 0xd2b   :  { %1492 = vst.msk [vmem:[#allocation12 + $0x8] sm:$0xff] %vm101_vm0, %v1489_v0 }
 0xd2c   :  { %1505 = dma.vmem_to_hbm [thread:$0]  %s1498_s19, 256, %s1500_s22, [#allocation4], %s1833_s28, %s1833_s28, %s1834_s29  }
 0xd2d   :  { %1829 = dma.done.wait [#allocation4], 256  }
 0xd2e   :  { %1830 = vsyncadd [#allocation4], 4294967040 }
 0xd2f   :  { %1510 = vsyncpa [#allocation3], 1 }
 0xd30   :  { %1511 = vsyncpa [#allocation7], 1 }
 0xd31   :  { %1512 = vsyncpa [#allocation10], 1 }
 0xd32   :  { %1513 = vsyncpa [#allocation4], 1 }
 0xd33   :  { %1514 = vsyncpa [#allocation5], 1 }

</bundles_post_ra>
